<compile_context>
chip_gen: v7x
topology: tpu7x:2x2x1
jax: 0.10.0
libtpu: 0.0.40
codegen_flags: <defaults>
</compile_context>

<pallas_src>
import numpy as np
import jax
import jax.numpy as jnp
from jax.experimental import pallas as pl
from jax.experimental.pallas import tpu as pltpu

skeleton_edges_alphapose = [(0, 5), (0, 6), (1, 2), (2, 4), (1, 3), (5, 7), (7, 9),
                            (6, 8), (8, 10), (5, 6), (5, 11), (6, 12), (11, 12),
                            (11, 13), (13, 15), (12, 14), (14, 16)]

NUM_KEYPOINTS = 17   # nodes per graph
NUM_FEATURES = 2     # (x, y)
HIDDEN_DIM = 32
LSTM_HIDDEN = 32
NUM_CLASSES = 1
BATCH = 2            # number of keypoint batches (windows)
WINDOW = 8           # frames per window (window_size)

SUB = 8              # sublane tile height used for the LSTM state / output tile
LANE = 128           # lane tile width used for the output tile


def build_gcn_adjacency(num_nodes, edges):
    """PyG GCNConv normalization.  Mirrors the reference exactly: edge_index is the
    DIRECTED skeleton edge list (no reverse edges are added by the original forward),
    self-loops added by GCNConv.  deg[i] = #incoming edges at i (+1 self loop);
    A_norm[dst, src] = deg^-1/2[src] * deg^-1/2[dst]."""
    row = [s for s, t in edges] + list(range(num_nodes))   # sources
    col = [t for s, t in edges] + list(range(num_nodes))   # targets
    deg = np.zeros(num_nodes, np.float32)
    for c in col:
        deg[c] += 1.0
    dinv = np.where(deg > 0, 1.0 / np.sqrt(deg), 0.0).astype(np.float32)
    a = np.zeros((num_nodes, num_nodes), np.float32)
    for r, c in zip(row, col):
        a[c, r] += dinv[r] * dinv[c]
    return jnp.asarray(a)


def build_graph_constants(a_norm, window, num_nodes):
    """Input-independent constants, built ONCE (outside the per-call wrapper):
       * block-diagonal normalized adjacency for the `window` frame-graphs of one window
       * mean-pool matrix mapping stacked node rows -> one pooled row per frame."""
    eye_t = jnp.eye(window, dtype=jnp.float32)
    a_blk = jnp.kron(eye_t, a_norm)                                           # (T*N, T*N)
    pool = jnp.kron(eye_t, jnp.full((1, num_nodes), 1.0 / num_nodes, jnp.float32))  # (T, T*N)
    return a_blk, pool


# ----------------------- fused GCN + LSTM + FC-head kernel (one window) -----------------------

def _make_window_kernel(window, num_nodes, num_feats, hidden, lstm_hidden):
    T, N, F, H, HL = window, num_nodes, num_feats, hidden, lstm_hidden

    def kernel(x_ref, a_ref, p_ref, w1_ref, b1_ref, w2_ref, b2_ref,
               wih_ref, whh_ref, bl_ref, wfc_ref, bfc_ref, out_ref):
        # ----------------- GCN encoder: all T frame-graphs of this window -----------------
        x = x_ref[...]                                                   # (T*N, F) sublane-stacked
        # input linear has K = F = 2: do it on the VPU (two rank-1 broadcasts) instead of
        # a 2-deep MXU contraction.
        xw = x[:, 0:1] * w1_ref[0:1, :]
        for k in range(1, F):
            xw = xw + x[:, k:k + 1] * w1_ref[k:k + 1, :]                 # (T*N, H)
        a = a_ref[...]                                                   # block-diag adjacency
        h1 = jnp.maximum(
            jnp.dot(a, xw, preferred_element_type=jnp.float32) + b1_ref[...], 0.0)
        hw = jnp.dot(h1, w2_ref[...], preferred_element_type=jnp.float32)
        h2 = jnp.maximum(
            jnp.dot(a, hw, preferred_element_type=jnp.float32) + b2_ref[...], 0.0)
        # global_mean_pool per frame via constant pooling matrix: (T, T*N) @ (T*N, H) -> (T, H)
        pooled = jnp.dot(p_ref[...], h2, preferred_element_type=jnp.float32)

        # --------------------------- LSTM (T fully unrolled) -----------------------------
        # input projection hoisted out of the recurrence: all timesteps at once, (T, 4*HL)
        gates_in = (jnp.dot(pooled, wih_ref[...], preferred_element_type=jnp.float32)
                    + bl_ref[...])
        whh = whh_ref[...]                                               # (HL, 4*HL)
        # keep the recurrent state as a full (SUB, HL) sublane tile (rows identical) so all
        # matmuls / slices stay tile-aligned; this is free on the MXU.
        h_st = jnp.zeros((SUB, HL), jnp.float32)
        c_st = jnp.zeros((SUB, HL), jnp.float32)
        m = None
        for t in range(T):
            gates = (gates_in[t:t + 1, :]
                     + jnp.dot(h_st, whh, preferred_element_type=jnp.float32))  # (SUB, 4*HL)
            sig = jax.nn.sigmoid(gates)      # whole gates vreg through the EUP, sliced after
            tah = jnp.tanh(gates)
            i_g = sig[:, 0 * HL:1 * HL]
            f_g = sig[:, 1 * HL:2 * HL]
            g_g = tah[:, 2 * HL:3 * HL]
            o_g = sig[:, 3 * HL:4 * HL]
            c_st = f_g * c_st + i_g * g_g
            h_st = o_g * jnp.tanh(c_st)
            m = h_st if m is None else jnp.maximum(m, h_st)              # max over time

        # --------------------- FC head (C == 1) as a lane reduce + sigmoid ----------------
        logit = jnp.sum(m * wfc_ref[...], axis=-1, keepdims=True) + bfc_ref[...]   # (SUB, 1)
        out_ref[...] = jnp.broadcast_to(jax.nn.sigmoid(logit), out_ref.shape)       # (SUB, LANE)

    return kernel


# ----------------------------------- wrapper -------------------------------------

def temporal_dynamic_gcn_forward(keypoints, params, a_blk, pool_mat):
    """keypoints: (B, T, N, F) float32  ->  score: (B,) float32 in (0, 1)."""
    b, t, n, f = keypoints.shape
    h = params["w1"].shape[1]
    hl = params["whh"].shape[0]
    tn = t * n

    # contiguous, no-copy relayout: window b occupies rows b*T*N .. (b+1)*T*N - 1,
    # frame-major / node-minor — matches the block-diag adjacency and pool matrix.
    x_stack = keypoints.reshape(b * tn, f)

    kernel = _make_window_kernel(t, n, f, h, hl)

    out = pl.pallas_call(
        kernel,
        out_shape=jax.ShapeDtypeStruct((b, SUB, LANE), jnp.float32),
        grid=(b,),
        in_specs=[
            pl.BlockSpec((tn, f), lambda i: (i, 0)),        # this window's stacked node rows
            pl.BlockSpec((tn, tn), lambda i: (0, 0)),       # block-diag adjacency (constant)
            pl.BlockSpec((t, tn), lambda i: (0, 0)),        # mean-pool matrix (constant)
            pl.BlockSpec((f, h), lambda i: (0, 0)),         # w1
            pl.BlockSpec((1, h), lambda i: (0, 0)),         # b1
            pl.BlockSpec((h, h), lambda i: (0, 0)),         # w2
            pl.BlockSpec((1, h), lambda i: (0, 0)),         # b2
            pl.BlockSpec((h, 4 * hl), lambda i: (0, 0)),    # W_ih (transposed)
            pl.BlockSpec((hl, 4 * hl), lambda i: (0, 0)),   # W_hh (transposed)
            pl.BlockSpec((1, 4 * hl), lambda i: (0, 0)),    # b_ih + b_hh
            pl.BlockSpec((1, hl), lambda i: (0, 0)),        # fc.weight (1, HL)
            pl.BlockSpec((1, 1), lambda i: (0, 0)),         # fc.bias
        ],
        out_specs=pl.BlockSpec((None, SUB, LANE), lambda i: (i, 0, 0)),
        compiler_params=pltpu.CompilerParams(
            dimension_semantics=("parallel",)),             # v7x: one window per TensorCore
    )(x_stack, a_blk, pool_mat,
      params["w1"], params["b1"], params["w2"], params["b2"],
      params["wih"], params["whh"], params["blstm"],
      params["wfc"], params["bfc"])
    return out[:, 0, 0]                                      # sigmoid(fc(...)).squeeze(1)

# TODO(synk): torch.from_numpy / torch_geometric Data() graph-object construction and the
# host<->device shuttling in the original forward are host-side glue with no kernel
# equivalent (the graph structure is folded into the precomputed normalized adjacency).


# ----------------------------- pure-JAX reference (value check) -----------------------------

def reference_forward(keypoints, params, a_norm):
    hp = jax.lax.Precision.HIGHEST
    b, t, n, f = keypoints.shape
    hl = params["whh"].shape[0]
    x = keypoints.reshape(b * t, n, f)
    xw = jnp.einsum("gnf,fh->gnh", x, params["w1"], precision=hp)
    h1 = jax.nn.relu(jnp.einsum("nm,gmh->gnh", a_norm, xw, precision=hp) + params["b1"])
    hw = jnp.einsum("gnh,hk->gnk", h1, params["w2"], precision=hp)
    h2 = jax.nn.relu(jnp.einsum("nm,gmh->gnh", a_norm, hw, precision=hp) + params["b2"])
    pooled = h2.mean(axis=1).reshape(b, t, -1)                  # (B, T, H)
    h_st = jnp.zeros((b, hl), jnp.float32)
    c_st = jnp.zeros((b, hl), jnp.float32)
    hs = []
    for step in range(t):
        gates = (jnp.dot(pooled[:, step, :], params["wih"], precision=hp)
                 + jnp.dot(h_st, params["whh"], precision=hp) + params["blstm"])
        i_g = jax.nn.sigmoid(gates[:, 0 * hl:1 * hl])
        f_g = jax.nn.sigmoid(gates[:, 1 * hl:2 * hl])
        g_g = jnp.tanh(gates[:, 2 * hl:3 * hl])
        o_g = jax.nn.sigmoid(gates[:, 3 * hl:4 * hl])
        c_st = f_g * c_st + i_g * g_g
        h_st = o_g * jnp.tanh(c_st)
        hs.append(h_st)
    m = jnp.max(jnp.stack(hs, axis=1), axis=1)                  # (B, HL)
    logits = jnp.dot(m, params["wfc"].T, precision=hp) + params["bfc"]
    return jax.nn.sigmoid(logits)[:, 0]


def init_params(key):
    ks = jax.random.split(key, 8)
    scale = 0.1
    params = {
        "w1": scale * jax.random.normal(ks[0], (NUM_FEATURES, HIDDEN_DIM), jnp.float32),
        "b1": scale * jax.random.normal(ks[1], (1, HIDDEN_DIM), jnp.float32),
        "w2": scale * jax.random.normal(ks[2], (HIDDEN_DIM, HIDDEN_DIM), jnp.float32),
        "b2": scale * jax.random.normal(ks[3], (1, HIDDEN_DIM), jnp.float32),
        # PyTorch LSTM weights are (4*Hl, in) / (4*Hl, Hl); stored transposed here,
        # gate order i, f, g, o.  b = b_ih + b_hh combined.
        "wih": scale * jax.random.normal(ks[4], (HIDDEN_DIM, 4 * LSTM_HIDDEN), jnp.float32),
        "whh": scale * jax.random.normal(ks[5], (LSTM_HIDDEN, 4 * LSTM_HIDDEN), jnp.float32),
        "blstm": scale * jax.random.normal(ks[6], (1, 4 * LSTM_HIDDEN), jnp.float32),
        # fc.weight has PyTorch shape (num_classes, lstm_hidden); fc.bias (1, 1).
        "wfc": scale * jax.random.normal(ks[7], (NUM_CLASSES, LSTM_HIDDEN), jnp.float32),
        "bfc": jnp.zeros((1, NUM_CLASSES), jnp.float32),
    }
    return params


if __name__ == "__main__":
    key = jax.random.PRNGKey(0)
    k_x, k_p = jax.random.split(key)

    # all_keypoint_batches: BATCH windows x WINDOW frames x 17 keypoints x (x, y)
    keypoints = jax.random.normal(
        k_x, (BATCH, WINDOW, NUM_KEYPOINTS, NUM_FEATURES), jnp.float32)

    params = init_params(k_p)
    a_norm = build_gcn_adjacency(NUM_KEYPOINTS, skeleton_edges_alphapose)
    # input-independent constants, built once (NOT per forward call)
    a_blk, pool_mat = build_graph_constants(a_norm, WINDOW, NUM_KEYPOINTS)

    fwd = jax.jit(temporal_dynamic_gcn_forward)
    score = jax.block_until_ready(fwd(keypoints, params, a_blk, pool_mat))

    assert score.shape == (BATCH,)
    assert bool(jnp.all(jnp.isfinite(score)))
    assert bool(jnp.all((score > 0.0) & (score < 1.0)))

    # value-level check against a pure-JAX reference (layout-sensitive pieces covered, B >= 2)
    ref = jax.block_until_ready(jax.jit(reference_forward)(keypoints, params, a_norm))
    max_err = float(jnp.max(jnp.abs(score - ref)))
    assert max_err < 2e-3, f"kernel/reference mismatch: max abs err = {max_err}"

    print("KERNEL_OK")
</pallas_src>

<mosaic_0001>
module attributes {stable_mosaic.version = 11 : i64} {
  func.func @kernel(%arg0: i32, %arg1: memref<136x2xf32, #tpu.memory_space<vmem>>, %arg2: memref<136x136xf32, #tpu.memory_space<vmem>>, %arg3: memref<8x136xf32, #tpu.memory_space<vmem>>, %arg4: memref<2x32xf32, #tpu.memory_space<vmem>>, %arg5: memref<1x32xf32, #tpu.memory_space<vmem>>, %arg6: memref<32x32xf32, #tpu.memory_space<vmem>>, %arg7: memref<1x32xf32, #tpu.memory_space<vmem>>, %arg8: memref<32x128xf32, #tpu.memory_space<vmem>>, %arg9: memref<32x128xf32, #tpu.memory_space<vmem>>, %arg10: memref<1x128xf32, #tpu.memory_space<vmem>>, %arg11: memref<1x32xf32, #tpu.memory_space<vmem>>, %arg12: memref<1x1xf32, #tpu.memory_space<vmem>>, %arg13: memref<1x8x128xf32, #tpu.memory_space<vmem>>) attributes {dimension_semantics = [#tpu.dimension_semantics<parallel>], iteration_bounds = array<i64: 2>, scalar_prefetch = 0 : i64, scratch_operands = 0 : i64, tpu.core_type = #tpu.core_type<tc>, window_params = [{transform_indices = @transform_0, window_bounds = array<i64: 136, 2>}, {pipeline_mode = #tpu.pipeline_mode<synchronous>, transform_indices = @transform_1, window_bounds = array<i64: 136, 136>}, {pipeline_mode = #tpu.pipeline_mode<synchronous>, transform_indices = @transform_2, window_bounds = array<i64: 8, 136>}, {pipeline_mode = #tpu.pipeline_mode<synchronous>, transform_indices = @transform_3, window_bounds = array<i64: 2, 32>}, {pipeline_mode = #tpu.pipeline_mode<synchronous>, transform_indices = @transform_4, window_bounds = array<i64: 1, 32>}, {pipeline_mode = #tpu.pipeline_mode<synchronous>, transform_indices = @transform_5, window_bounds = array<i64: 32, 32>}, {pipeline_mode = #tpu.pipeline_mode<synchronous>, transform_indices = @transform_6, window_bounds = array<i64: 1, 32>}, {pipeline_mode = #tpu.pipeline_mode<synchronous>, transform_indices = @transform_7, window_bounds = array<i64: 32, 128>}, {pipeline_mode = #tpu.pipeline_mode<synchronous>, transform_indices = @transform_8, window_bounds = array<i64: 32, 128>}, {pipeline_mode = #tpu.pipeline_mode<synchronous>, transform_indices = @transform_9, window_bounds = array<i64: 1, 128>}, {pipeline_mode = #tpu.pipeline_mode<synchronous>, transform_indices = @transform_10, window_bounds = array<i64: 1, 32>}, {pipeline_mode = #tpu.pipeline_mode<synchronous>, transform_indices = @transform_11, window_bounds = array<i64: 1, 1>}, {transform_indices = @transform_12, window_bounds = array<i64: 1, 8, 128>}]} {
    %c0 = arith.constant 0 : index
    %c0_0 = arith.constant 0 : index
    %0 = vector.load %arg1[%c0, %c0_0] : memref<136x2xf32, #tpu.memory_space<vmem>>, vector<136x2xf32>
    %1 = vector.extract_strided_slice %0 {offsets = [0, 0], sizes = [136, 1], strides = [1, 1]} : vector<136x2xf32> to vector<136x1xf32>
    %c0_1 = arith.constant 0 : index
    %c0_2 = arith.constant 0 : index
    %2 = vector.load %arg4[%c0_1, %c0_2] : memref<2x32xf32, #tpu.memory_space<vmem>>, vector<1x32xf32>
    %3 = vector.broadcast %1 : vector<136x1xf32> to vector<136x32xf32>
    %4 = vector.broadcast %2 : vector<1x32xf32> to vector<136x32xf32>
    %5 = arith.mulf %3, %4 : vector<136x32xf32>
    %6 = vector.extract_strided_slice %0 {offsets = [0, 1], sizes = [136, 1], strides = [1, 1]} : vector<136x2xf32> to vector<136x1xf32>
    %c1 = arith.constant 1 : index
    %c0_3 = arith.constant 0 : index
    %7 = vector.load %arg4[%c1, %c0_3] : memref<2x32xf32, #tpu.memory_space<vmem>>, vector<1x32xf32>
    %8 = vector.broadcast %6 : vector<136x1xf32> to vector<136x32xf32>
    %9 = vector.broadcast %7 : vector<1x32xf32> to vector<136x32xf32>
    %10 = arith.mulf %8, %9 : vector<136x32xf32>
    %11 = arith.addf %5, %10 : vector<136x32xf32>
    %c0_4 = arith.constant 0 : index
    %c0_5 = arith.constant 0 : index
    %12 = vector.load %arg2[%c0_4, %c0_5] : memref<136x136xf32, #tpu.memory_space<vmem>>, vector<136x136xf32>
    %cst = arith.constant dense<0.000000e+00> : vector<136x32xf32>
    %13 = tpu.matmul %12, %11, %cst {dimension_numbers = #tpu.dot_dimension_numbers<[1], [0], [0], [1], [0, 0, 1, 1], [], []>} : vector<136x136xf32>, vector<136x32xf32>, vector<136x32xf32> -> vector<136x32xf32>
    %c0_6 = arith.constant 0 : index
    %c0_7 = arith.constant 0 : index
    %14 = vector.load %arg5[%c0_6, %c0_7] : memref<1x32xf32, #tpu.memory_space<vmem>>, vector<1x32xf32>
    %15 = vector.broadcast %14 : vector<1x32xf32> to vector<136x32xf32>
    %16 = arith.addf %13, %15 : vector<136x32xf32>
    %cst_8 = arith.constant 0.000000e+00 : f32
    %17 = vector.broadcast %cst_8 : f32 to vector<136x32xf32>
    %18 = arith.maximumf %16, %17 : vector<136x32xf32>
    %c0_9 = arith.constant 0 : index
    %c0_10 = arith.constant 0 : index
    %19 = vector.load %arg6[%c0_9, %c0_10] : memref<32x32xf32, #tpu.memory_space<vmem>>, vector<32x32xf32>
    %cst_11 = arith.constant dense<0.000000e+00> : vector<136x32xf32>
    %20 = tpu.matmul %18, %19, %cst_11 {dimension_numbers = #tpu.dot_dimension_numbers<[1], [0], [0], [1], [0, 0, 1, 1], [], []>} : vector<136x32xf32>, vector<32x32xf32>, vector<136x32xf32> -> vector<136x32xf32>
    %cst_12 = arith.constant dense<0.000000e+00> : vector<136x32xf32>
    %21 = tpu.matmul %12, %20, %cst_12 {dimension_numbers = #tpu.dot_dimension_numbers<[1], [0], [0], [1], [0, 0, 1, 1], [], []>} : vector<136x136xf32>, vector<136x32xf32>, vector<136x32xf32> -> vector<136x32xf32>
    %c0_13 = arith.constant 0 : index
    %c0_14 = arith.constant 0 : index
    %22 = vector.load %arg7[%c0_13, %c0_14] : memref<1x32xf32, #tpu.memory_space<vmem>>, vector<1x32xf32>
    %23 = vector.broadcast %22 : vector<1x32xf32> to vector<136x32xf32>
    %24 = arith.addf %21, %23 : vector<136x32xf32>
    %cst_15 = arith.constant 0.000000e+00 : f32
    %25 = vector.broadcast %cst_15 : f32 to vector<136x32xf32>
    %26 = arith.maximumf %24, %25 : vector<136x32xf32>
    %c0_16 = arith.constant 0 : index
    %c0_17 = arith.constant 0 : index
    %27 = vector.load %arg3[%c0_16, %c0_17] : memref<8x136xf32, #tpu.memory_space<vmem>>, vector<8x136xf32>
    %cst_18 = arith.constant dense<0.000000e+00> : vector<8x32xf32>
    %28 = tpu.matmul %27, %26, %cst_18 {dimension_numbers = #tpu.dot_dimension_numbers<[1], [0], [0], [1], [0, 0, 1, 1], [], []>} : vector<8x136xf32>, vector<136x32xf32>, vector<8x32xf32> -> vector<8x32xf32>
    %c0_19 = arith.constant 0 : index
    %c0_20 = arith.constant 0 : index
    %29 = vector.load %arg8[%c0_19, %c0_20] : memref<32x128xf32, #tpu.memory_space<vmem>>, vector<32x128xf32>
    %cst_21 = arith.constant dense<0.000000e+00> : vector<8x128xf32>
    %30 = tpu.matmul %28, %29, %cst_21 {dimension_numbers = #tpu.dot_dimension_numbers<[1], [0], [0], [1], [0, 0, 1, 1], [], []>} : vector<8x32xf32>, vector<32x128xf32>, vector<8x128xf32> -> vector<8x128xf32>
    %c0_22 = arith.constant 0 : index
    %c0_23 = arith.constant 0 : index
    %31 = vector.load %arg10[%c0_22, %c0_23] : memref<1x128xf32, #tpu.memory_space<vmem>>, vector<1x128xf32>
    %32 = vector.broadcast %31 : vector<1x128xf32> to vector<8x128xf32>
    %33 = arith.addf %30, %32 : vector<8x128xf32>
    %c0_24 = arith.constant 0 : index
    %c0_25 = arith.constant 0 : index
    %34 = vector.load %arg9[%c0_24, %c0_25] : memref<32x128xf32, #tpu.memory_space<vmem>>, vector<32x128xf32>
    %cst_26 = arith.constant 0.000000e+00 : f32
    %35 = vector.broadcast %cst_26 : f32 to vector<8x32xf32>
    %cst_27 = arith.constant 0.000000e+00 : f32
    %36 = vector.broadcast %cst_27 : f32 to vector<8x32xf32>
    %37 = vector.extract_strided_slice %33 {offsets = [0, 0], sizes = [1, 128], strides = [1, 1]} : vector<8x128xf32> to vector<1x128xf32>
    %cst_28 = arith.constant dense<0.000000e+00> : vector<8x128xf32>
    %38 = tpu.matmul %35, %34, %cst_28 {dimension_numbers = #tpu.dot_dimension_numbers<[1], [0], [0], [1], [0, 0, 1, 1], [], []>} : vector<8x32xf32>, vector<32x128xf32>, vector<8x128xf32> -> vector<8x128xf32>
    %39 = vector.broadcast %37 : vector<1x128xf32> to vector<8x128xf32>
    %40 = arith.addf %39, %38 : vector<8x128xf32>
    %41 = arith.negf %40 : vector<8x128xf32>
    %42 = math.exp %41 : vector<8x128xf32>
    %cst_29 = arith.constant 1.000000e+00 : f32
    %43 = vector.broadcast %cst_29 : f32 to vector<8x128xf32>
    %44 = arith.addf %43, %42 : vector<8x128xf32>
    %45 = arith.divf %43, %44 : vector<8x128xf32>
    %46 = math.tanh %40 : vector<8x128xf32>
    %47 = vector.extract_strided_slice %45 {offsets = [0, 0], sizes = [8, 32], strides = [1, 1]} : vector<8x128xf32> to vector<8x32xf32>
    %48 = vector.extract_strided_slice %45 {offsets = [0, 32], sizes = [8, 32], strides = [1, 1]} : vector<8x128xf32> to vector<8x32xf32>
    %49 = vector.extract_strided_slice %46 {offsets = [0, 64], sizes = [8, 32], strides = [1, 1]} : vector<8x128xf32> to vector<8x32xf32>
    %50 = vector.extract_strided_slice %45 {offsets = [0, 96], sizes = [8, 32], strides = [1, 1]} : vector<8x128xf32> to vector<8x32xf32>
    %51 = arith.mulf %48, %36 : vector<8x32xf32>
    %52 = arith.mulf %47, %49 : vector<8x32xf32>
    %53 = arith.addf %51, %52 : vector<8x32xf32>
    %54 = math.tanh %53 : vector<8x32xf32>
    %55 = arith.mulf %50, %54 : vector<8x32xf32>
    %56 = vector.extract_strided_slice %33 {offsets = [1, 0], sizes = [1, 128], strides = [1, 1]} : vector<8x128xf32> to vector<1x128xf32>
    %cst_30 = arith.constant dense<0.000000e+00> : vector<8x128xf32>
    %57 = tpu.matmul %55, %34, %cst_30 {dimension_numbers = #tpu.dot_dimension_numbers<[1], [0], [0], [1], [0, 0, 1, 1], [], []>} : vector<8x32xf32>, vector<32x128xf32>, vector<8x128xf32> -> vector<8x128xf32>
    %58 = vector.broadcast %56 : vector<1x128xf32> to vector<8x128xf32>
    %59 = arith.addf %58, %57 : vector<8x128xf32>
    %60 = arith.negf %59 : vector<8x128xf32>
    %61 = math.exp %60 : vector<8x128xf32>
    %cst_31 = arith.constant 1.000000e+00 : f32
    %62 = vector.broadcast %cst_31 : f32 to vector<8x128xf32>
    %63 = arith.addf %62, %61 : vector<8x128xf32>
    %64 = arith.divf %62, %63 : vector<8x128xf32>
    %65 = math.tanh %59 : vector<8x128xf32>
    %66 = vector.extract_strided_slice %64 {offsets = [0, 0], sizes = [8, 32], strides = [1, 1]} : vector<8x128xf32> to vector<8x32xf32>
    %67 = vector.extract_strided_slice %64 {offsets = [0, 32], sizes = [8, 32], strides = [1, 1]} : vector<8x128xf32> to vector<8x32xf32>
    %68 = vector.extract_strided_slice %65 {offsets = [0, 64], sizes = [8, 32], strides = [1, 1]} : vector<8x128xf32> to vector<8x32xf32>
    %69 = vector.extract_strided_slice %64 {offsets = [0, 96], sizes = [8, 32], strides = [1, 1]} : vector<8x128xf32> to vector<8x32xf32>
    %70 = arith.mulf %67, %53 : vector<8x32xf32>
    %71 = arith.mulf %66, %68 : vector<8x32xf32>
    %72 = arith.addf %70, %71 : vector<8x32xf32>
    %73 = math.tanh %72 : vector<8x32xf32>
    %74 = arith.mulf %69, %73 : vector<8x32xf32>
    %75 = arith.maximumf %55, %74 : vector<8x32xf32>
    %76 = vector.extract_strided_slice %33 {offsets = [2, 0], sizes = [1, 128], strides = [1, 1]} : vector<8x128xf32> to vector<1x128xf32>
    %cst_32 = arith.constant dense<0.000000e+00> : vector<8x128xf32>
    %77 = tpu.matmul %74, %34, %cst_32 {dimension_numbers = #tpu.dot_dimension_numbers<[1], [0], [0], [1], [0, 0, 1, 1], [], []>} : vector<8x32xf32>, vector<32x128xf32>, vector<8x128xf32> -> vector<8x128xf32>
    %78 = vector.broadcast %76 : vector<1x128xf32> to vector<8x128xf32>
    %79 = arith.addf %78, %77 : vector<8x128xf32>
    %80 = arith.negf %79 : vector<8x128xf32>
    %81 = math.exp %80 : vector<8x128xf32>
    %cst_33 = arith.constant 1.000000e+00 : f32
    %82 = vector.broadcast %cst_33 : f32 to vector<8x128xf32>
    %83 = arith.addf %82, %81 : vector<8x128xf32>
    %84 = arith.divf %82, %83 : vector<8x128xf32>
    %85 = math.tanh %79 : vector<8x128xf32>
    %86 = vector.extract_strided_slice %84 {offsets = [0, 0], sizes = [8, 32], strides = [1, 1]} : vector<8x128xf32> to vector<8x32xf32>
    %87 = vector.extract_strided_slice %84 {offsets = [0, 32], sizes = [8, 32], strides = [1, 1]} : vector<8x128xf32> to vector<8x32xf32>
    %88 = vector.extract_strided_slice %85 {offsets = [0, 64], sizes = [8, 32], strides = [1, 1]} : vector<8x128xf32> to vector<8x32xf32>
    %89 = vector.extract_strided_slice %84 {offsets = [0, 96], sizes = [8, 32], strides = [1, 1]} : vector<8x128xf32> to vector<8x32xf32>
    %90 = arith.mulf %87, %72 : vector<8x32xf32>
    %91 = arith.mulf %86, %88 : vector<8x32xf32>
    %92 = arith.addf %90, %91 : vector<8x32xf32>
    %93 = math.tanh %92 : vector<8x32xf32>
    %94 = arith.mulf %89, %93 : vector<8x32xf32>
    %95 = arith.maximumf %75, %94 : vector<8x32xf32>
    %96 = vector.extract_strided_slice %33 {offsets = [3, 0], sizes = [1, 128], strides = [1, 1]} : vector<8x128xf32> to vector<1x128xf32>
    %cst_34 = arith.constant dense<0.000000e+00> : vector<8x128xf32>
    %97 = tpu.matmul %94, %34, %cst_34 {dimension_numbers = #tpu.dot_dimension_numbers<[1], [0], [0], [1], [0, 0, 1, 1], [], []>} : vector<8x32xf32>, vector<32x128xf32>, vector<8x128xf32> -> vector<8x128xf32>
    %98 = vector.broadcast %96 : vector<1x128xf32> to vector<8x128xf32>
    %99 = arith.addf %98, %97 : vector<8x128xf32>
    %100 = arith.negf %99 : vector<8x128xf32>
    %101 = math.exp %100 : vector<8x128xf32>
    %cst_35 = arith.constant 1.000000e+00 : f32
    %102 = vector.broadcast %cst_35 : f32 to vector<8x128xf32>
    %103 = arith.addf %102, %101 : vector<8x128xf32>
    %104 = arith.divf %102, %103 : vector<8x128xf32>
    %105 = math.tanh %99 : vector<8x128xf32>
    %106 = vector.extract_strided_slice %104 {offsets = [0, 0], sizes = [8, 32], strides = [1, 1]} : vector<8x128xf32> to vector<8x32xf32>
    %107 = vector.extract_strided_slice %104 {offsets = [0, 32], sizes = [8, 32], strides = [1, 1]} : vector<8x128xf32> to vector<8x32xf32>
    %108 = vector.extract_strided_slice %105 {offsets = [0, 64], sizes = [8, 32], strides = [1, 1]} : vector<8x128xf32> to vector<8x32xf32>
    %109 = vector.extract_strided_slice %104 {offsets = [0, 96], sizes = [8, 32], strides = [1, 1]} : vector<8x128xf32> to vector<8x32xf32>
    %110 = arith.mulf %107, %92 : vector<8x32xf32>
    %111 = arith.mulf %106, %108 : vector<8x32xf32>
    %112 = arith.addf %110, %111 : vector<8x32xf32>
    %113 = math.tanh %112 : vector<8x32xf32>
    %114 = arith.mulf %109, %113 : vector<8x32xf32>
    %115 = arith.maximumf %95, %114 : vector<8x32xf32>
    %116 = vector.extract_strided_slice %33 {offsets = [4, 0], sizes = [1, 128], strides = [1, 1]} : vector<8x128xf32> to vector<1x128xf32>
    %cst_36 = arith.constant dense<0.000000e+00> : vector<8x128xf32>
    %117 = tpu.matmul %114, %34, %cst_36 {dimension_numbers = #tpu.dot_dimension_numbers<[1], [0], [0], [1], [0, 0, 1, 1], [], []>} : vector<8x32xf32>, vector<32x128xf32>, vector<8x128xf32> -> vector<8x128xf32>
    %118 = vector.broadcast %116 : vector<1x128xf32> to vector<8x128xf32>
    %119 = arith.addf %118, %117 : vector<8x128xf32>
    %120 = arith.negf %119 : vector<8x128xf32>
    %121 = math.exp %120 : vector<8x128xf32>
    %cst_37 = arith.constant 1.000000e+00 : f32
    %122 = vector.broadcast %cst_37 : f32 to vector<8x128xf32>
    %123 = arith.addf %122, %121 : vector<8x128xf32>
    %124 = arith.divf %122, %123 : vector<8x128xf32>
    %125 = math.tanh %119 : vector<8x128xf32>
    %126 = vector.extract_strided_slice %124 {offsets = [0, 0], sizes = [8, 32], strides = [1, 1]} : vector<8x128xf32> to vector<8x32xf32>
    %127 = vector.extract_strided_slice %124 {offsets = [0, 32], sizes = [8, 32], strides = [1, 1]} : vector<8x128xf32> to vector<8x32xf32>
    %128 = vector.extract_strided_slice %125 {offsets = [0, 64], sizes = [8, 32], strides = [1, 1]} : vector<8x128xf32> to vector<8x32xf32>
    %129 = vector.extract_strided_slice %124 {offsets = [0, 96], sizes = [8, 32], strides = [1, 1]} : vector<8x128xf32> to vector<8x32xf32>
    %130 = arith.mulf %127, %112 : vector<8x32xf32>
    %131 = arith.mulf %126, %128 : vector<8x32xf32>
    %132 = arith.addf %130, %131 : vector<8x32xf32>
    %133 = math.tanh %132 : vector<8x32xf32>
    %134 = arith.mulf %129, %133 : vector<8x32xf32>
    %135 = arith.maximumf %115, %134 : vector<8x32xf32>
    %136 = vector.extract_strided_slice %33 {offsets = [5, 0], sizes = [1, 128], strides = [1, 1]} : vector<8x128xf32> to vector<1x128xf32>
    %cst_38 = arith.constant dense<0.000000e+00> : vector<8x128xf32>
    %137 = tpu.matmul %134, %34, %cst_38 {dimension_numbers = #tpu.dot_dimension_numbers<[1], [0], [0], [1], [0, 0, 1, 1], [], []>} : vector<8x32xf32>, vector<32x128xf32>, vector<8x128xf32> -> vector<8x128xf32>
    %138 = vector.broadcast %136 : vector<1x128xf32> to vector<8x128xf32>
    %139 = arith.addf %138, %137 : vector<8x128xf32>
    %140 = arith.negf %139 : vector<8x128xf32>
    %141 = math.exp %140 : vector<8x128xf32>
    %cst_39 = arith.constant 1.000000e+00 : f32
    %142 = vector.broadcast %cst_39 : f32 to vector<8x128xf32>
    %143 = arith.addf %142, %141 : vector<8x128xf32>
    %144 = arith.divf %142, %143 : vector<8x128xf32>
    %145 = math.tanh %139 : vector<8x128xf32>
    %146 = vector.extract_strided_slice %144 {offsets = [0, 0], sizes = [8, 32], strides = [1, 1]} : vector<8x128xf32> to vector<8x32xf32>
    %147 = vector.extract_strided_slice %144 {offsets = [0, 32], sizes = [8, 32], strides = [1, 1]} : vector<8x128xf32> to vector<8x32xf32>
    %148 = vector.extract_strided_slice %145 {offsets = [0, 64], sizes = [8, 32], strides = [1, 1]} : vector<8x128xf32> to vector<8x32xf32>
    %149 = vector.extract_strided_slice %144 {offsets = [0, 96], sizes = [8, 32], strides = [1, 1]} : vector<8x128xf32> to vector<8x32xf32>
    %150 = arith.mulf %147, %132 : vector<8x32xf32>
    %151 = arith.mulf %146, %148 : vector<8x32xf32>
    %152 = arith.addf %150, %151 : vector<8x32xf32>
    %153 = math.tanh %152 : vector<8x32xf32>
    %154 = arith.mulf %149, %153 : vector<8x32xf32>
    %155 = arith.maximumf %135, %154 : vector<8x32xf32>
    %156 = vector.extract_strided_slice %33 {offsets = [6, 0], sizes = [1, 128], strides = [1, 1]} : vector<8x128xf32> to vector<1x128xf32>
    %cst_40 = arith.constant dense<0.000000e+00> : vector<8x128xf32>
    %157 = tpu.matmul %154, %34, %cst_40 {dimension_numbers = #tpu.dot_dimension_numbers<[1], [0], [0], [1], [0, 0, 1, 1], [], []>} : vector<8x32xf32>, vector<32x128xf32>, vector<8x128xf32> -> vector<8x128xf32>
    %158 = vector.broadcast %156 : vector<1x128xf32> to vector<8x128xf32>
    %159 = arith.addf %158, %157 : vector<8x128xf32>
    %160 = arith.negf %159 : vector<8x128xf32>
    %161 = math.exp %160 : vector<8x128xf32>
    %cst_41 = arith.constant 1.000000e+00 : f32
    %162 = vector.broadcast %cst_41 : f32 to vector<8x128xf32>
    %163 = arith.addf %162, %161 : vector<8x128xf32>
    %164 = arith.divf %162, %163 : vector<8x128xf32>
    %165 = math.tanh %159 : vector<8x128xf32>
    %166 = vector.extract_strided_slice %164 {offsets = [0, 0], sizes = [8, 32], strides = [1, 1]} : vector<8x128xf32> to vector<8x32xf32>
    %167 = vector.extract_strided_slice %164 {offsets = [0, 32], sizes = [8, 32], strides = [1, 1]} : vector<8x128xf32> to vector<8x32xf32>
    %168 = vector.extract_strided_slice %165 {offsets = [0, 64], sizes = [8, 32], strides = [1, 1]} : vector<8x128xf32> to vector<8x32xf32>
    %169 = vector.extract_strided_slice %164 {offsets = [0, 96], sizes = [8, 32], strides = [1, 1]} : vector<8x128xf32> to vector<8x32xf32>
    %170 = arith.mulf %167, %152 : vector<8x32xf32>
    %171 = arith.mulf %166, %168 : vector<8x32xf32>
    %172 = arith.addf %170, %171 : vector<8x32xf32>
    %173 = math.tanh %172 : vector<8x32xf32>
    %174 = arith.mulf %169, %173 : vector<8x32xf32>
    %175 = arith.maximumf %155, %174 : vector<8x32xf32>
    %176 = vector.extract_strided_slice %33 {offsets = [7, 0], sizes = [1, 128], strides = [1, 1]} : vector<8x128xf32> to vector<1x128xf32>
    %cst_42 = arith.constant dense<0.000000e+00> : vector<8x128xf32>
    %177 = tpu.matmul %174, %34, %cst_42 {dimension_numbers = #tpu.dot_dimension_numbers<[1], [0], [0], [1], [0, 0, 1, 1], [], []>} : vector<8x32xf32>, vector<32x128xf32>, vector<8x128xf32> -> vector<8x128xf32>
    %178 = vector.broadcast %176 : vector<1x128xf32> to vector<8x128xf32>
    %179 = arith.addf %178, %177 : vector<8x128xf32>
    %180 = arith.negf %179 : vector<8x128xf32>
    %181 = math.exp %180 : vector<8x128xf32>
    %cst_43 = arith.constant 1.000000e+00 : f32
    %182 = vector.broadcast %cst_43 : f32 to vector<8x128xf32>
    %183 = arith.addf %182, %181 : vector<8x128xf32>
    %184 = arith.divf %182, %183 : vector<8x128xf32>
    %185 = math.tanh %179 : vector<8x128xf32>
    %186 = vector.extract_strided_slice %184 {offsets = [0, 0], sizes = [8, 32], strides = [1, 1]} : vector<8x128xf32> to vector<8x32xf32>
    %187 = vector.extract_strided_slice %184 {offsets = [0, 32], sizes = [8, 32], strides = [1, 1]} : vector<8x128xf32> to vector<8x32xf32>
    %188 = vector.extract_strided_slice %185 {offsets = [0, 64], sizes = [8, 32], strides = [1, 1]} : vector<8x128xf32> to vector<8x32xf32>
    %189 = vector.extract_strided_slice %184 {offsets = [0, 96], sizes = [8, 32], strides = [1, 1]} : vector<8x128xf32> to vector<8x32xf32>
    %190 = arith.mulf %187, %172 : vector<8x32xf32>
    %191 = arith.mulf %186, %188 : vector<8x32xf32>
    %192 = arith.addf %190, %191 : vector<8x32xf32>
    %193 = math.tanh %192 : vector<8x32xf32>
    %194 = arith.mulf %189, %193 : vector<8x32xf32>
    %195 = arith.maximumf %175, %194 : vector<8x32xf32>
    %c0_44 = arith.constant 0 : index
    %c0_45 = arith.constant 0 : index
    %196 = vector.load %arg11[%c0_44, %c0_45] : memref<1x32xf32, #tpu.memory_space<vmem>>, vector<1x32xf32>
    %197 = vector.broadcast %196 : vector<1x32xf32> to vector<8x32xf32>
    %198 = arith.mulf %195, %197 : vector<8x32xf32>
    %cst_46 = arith.constant dense<0.000000e+00> : vector<8xf32>
    %199 = vector.multi_reduction <add>, %198, %cst_46 [1] : vector<8x32xf32> to vector<8xf32>
    %200 = vector.shape_cast %199 : vector<8xf32> to vector<8x1xf32>
    %c0_47 = arith.constant 0 : index
    %c0_48 = arith.constant 0 : index
    %201 = vector.load %arg12[%c0_47, %c0_48] : memref<1x1xf32, #tpu.memory_space<vmem>>, vector<1x1xf32>
    %202 = vector.broadcast %201 : vector<1x1xf32> to vector<8x1xf32>
    %203 = arith.addf %200, %202 : vector<8x1xf32>
    %204 = arith.negf %203 : vector<8x1xf32>
    %205 = math.exp %204 : vector<8x1xf32>
    %cst_49 = arith.constant 1.000000e+00 : f32
    %206 = vector.broadcast %cst_49 : f32 to vector<8x1xf32>
    %207 = arith.addf %206, %205 : vector<8x1xf32>
    %208 = arith.divf %206, %207 : vector<8x1xf32>
    %209 = vector.shape_cast %208 : vector<8x1xf32> to vector<8x1xf32>
    %210 = vector.broadcast %209 : vector<8x1xf32> to vector<8x128xf32>
    %c0_50 = arith.constant 0 : index
    %c0_51 = arith.constant 0 : index
    %c0_52 = arith.constant 0 : index
    %211 = vector.load %arg13[%c0_50, %c0_51, %c0_52] : memref<1x8x128xf32, #tpu.memory_space<vmem>>, vector<1x8x128xf32>
    %212 = vector.shape_cast %211 : vector<1x8x128xf32> to vector<8x128xf32>
    %213 = vector.shape_cast %210 : vector<8x128xf32> to vector<1x8x128xf32>
    tpu.vector_store %arg13[%c0_50, %c0_51, %c0_52], %213 {strides = array<i32>} : memref<1x8x128xf32, #tpu.memory_space<vmem>>, vector<1x8x128xf32>,
    return
  }
  func.func @transform_0(%arg0: i32) -> (i32, i32) {
    %c0_i32 = arith.constant 0 : i32
    %c0_i32_0 = arith.constant 0 : i32
    return %arg0, %c0_i32 : i32, i32
  }
  func.func @transform_1(%arg0: i32) -> (i32, i32) {
    %c0_i32 = arith.constant 0 : i32
    %c0_i32_0 = arith.constant 0 : i32
    %c0_i32_1 = arith.constant 0 : i32
    return %c0_i32, %c0_i32_0 : i32, i32
  }
  func.func @transform_2(%arg0: i32) -> (i32, i32) {
    %c0_i32 = arith.constant 0 : i32
    %c0_i32_0 = arith.constant 0 : i32
    %c0_i32_1 = arith.constant 0 : i32
    return %c0_i32, %c0_i32_0 : i32, i32
  }
  func.func @transform_3(%arg0: i32) -> (i32, i32) {
    %c0_i32 = arith.constant 0 : i32
    %c0_i32_0 = arith.constant 0 : i32
    %c0_i32_1 = arith.constant 0 : i32
    return %c0_i32, %c0_i32_0 : i32, i32
  }
  func.func @transform_4(%arg0: i32) -> (i32, i32) {
    %c0_i32 = arith.constant 0 : i32
    %c0_i32_0 = arith.constant 0 : i32
    %c0_i32_1 = arith.constant 0 : i32
    return %c0_i32, %c0_i32_0 : i32, i32
  }
  func.func @transform_5(%arg0: i32) -> (i32, i32) {
    %c0_i32 = arith.constant 0 : i32
    %c0_i32_0 = arith.constant 0 : i32
    %c0_i32_1 = arith.constant 0 : i32
    return %c0_i32, %c0_i32_0 : i32, i32
  }
  func.func @transform_6(%arg0: i32) -> (i32, i32) {
    %c0_i32 = arith.constant 0 : i32
    %c0_i32_0 = arith.constant 0 : i32
    %c0_i32_1 = arith.constant 0 : i32
    return %c0_i32, %c0_i32_0 : i32, i32
  }
  func.func @transform_7(%arg0: i32) -> (i32, i32) {
    %c0_i32 = arith.constant 0 : i32
    %c0_i32_0 = arith.constant 0 : i32
    %c0_i32_1 = arith.constant 0 : i32
    return %c0_i32, %c0_i32_0 : i32, i32
  }
  func.func @transform_8(%arg0: i32) -> (i32, i32) {
    %c0_i32 = arith.constant 0 : i32
    %c0_i32_0 = arith.constant 0 : i32
    %c0_i32_1 = arith.constant 0 : i32
    return %c0_i32, %c0_i32_0 : i32, i32
  }
  func.func @transform_9(%arg0: i32) -> (i32, i32) {
    %c0_i32 = arith.constant 0 : i32
    %c0_i32_0 = arith.constant 0 : i32
    %c0_i32_1 = arith.constant 0 : i32
    return %c0_i32, %c0_i32_0 : i32, i32
  }
  func.func @transform_10(%arg0: i32) -> (i32, i32) {
    %c0_i32 = arith.constant 0 : i32
    %c0_i32_0 = arith.constant 0 : i32
    %c0_i32_1 = arith.constant 0 : i32
    return %c0_i32, %c0_i32_0 : i32, i32
  }
  func.func @transform_11(%arg0: i32) -> (i32, i32) {
    %c0_i32 = arith.constant 0 : i32
    %c0_i32_0 = arith.constant 0 : i32
    %c0_i32_1 = arith.constant 0 : i32
    return %c0_i32, %c0_i32_0 : i32, i32
  }
  func.func @transform_12(%arg0: i32) -> (i32, i32, i32) {
    %c0_i32 = arith.constant 0 : i32
    %c0_i32_0 = arith.constant 0 : i32
    %c0_i32_1 = arith.constant 0 : i32
    return %arg0, %c0_i32, %c0_i32_0 : i32, i32, i32
  }
}

</mosaic_0001>

<bundles_post_ra>
// kernel: temporal_dynamic_gcn_forward.1
= control target key start
LH: loop header
LB: loop body
LE: loop exit
PB: predicated region body
PF: predicated region fallthrough
CT: control target
= control target key end

     0   :  { %s3006_s23 = smov 0   ;;  %s3672_s0 = inlined_call_operand.vmem [shape: f32[272,2], index: 0, kind: input, shape index: {}]   ;;  %s3673_s1 = inlined_call_operand.vmem [shape: f32[136,136], index: 1, kind: input, shape index: {}]   ;;  %s3674_s2 = inlined_call_operand.vmem [shape: f32[8,136], index: 2, kind: input, shape index: {}]   ;;  %s3675_s3 = inlined_call_operand.vmem [shape: f32[2,32], index: 3, kind: input, shape index: {}]   ;;  %s3676_s4 = inlined_call_operand.vmem [shape: f32[1,32], index: 4, kind: input, shape index: {}]   ;;  %s3677_s5 = inlined_call_operand.vmem [shape: f32[32,32], index: 5, kind: input, shape index: {}]   ;;  %s3678_s6 = inlined_call_operand.vmem [shape: f32[1,32], index: 6, kind: input, shape index: {}]   ;;  %s3679_s7 = inlined_call_operand.vmem [shape: f32[32,128], index: 7, kind: input, shape index: {}]   ;;  %s3680_s8 = inlined_call_operand.vmem [shape: f32[32,128], index: 8, kind: input, shape index: {}]   ;;  %s3681_s9 = inlined_call_operand.vmem [shape: f32[1,128], index: 9, kind: input, shape index: {}]   ;;  %s3682_s10 = inlined_call_operand.vmem [shape: f32[1,32], index: 10, kind: input, shape index: {}]   ;;  %s3683_s11 = inlined_call_operand.<no memory space> [shape: f32[1,1], index: 11, kind: input, shape index: {}]   ;;  %s3684_s12 = inlined_call_operand.vmem [shape: f32[2,8,128], index: 12, kind: output, shape index: {}]  }
   0x1   :  { %v17_v0 = vstv %s3683_s11 }
   0x2   :  { %18 = vst [vmem:[#allocation2] sm:$0x1] %v17_v0 }
   0x3 LB: > { %s3012_s24 = sadd.s32 4294967295, %s2928_s23   ;;  %p2381_p0 = scmp.ge.s32.totalorder %s2928_s23, 1  ;;  %s2928_s23 = sphi %s3006_s23, %s24_s23  }
   0x4   : > { %p365_p1 = scmp.lt.s32.totalorder %s2928_s23, 3 }
   0x6   : > { %p366_p2 = pnand %p2381_p0, %p365_p1 }
   0x7   : > { %s406_s25 = smul.u32 (!%p366_p2), 17, %s3012_s24  ;;  %v2930_v1 = vmov (!%p366_p2), 1   ;;  %v2931_v8 = vmov (!%p366_p2), 0   ;;  %v2932_v11 = vmov (!%p366_p2), 0.0|0.0   ;;  %v3054_v21 = vld [vmem:[%s3673_s1 + $0x8] sm:$0xff] (!%p366_p2)  ;;  %vm688_vm0 = vcmask (!%p366_p2), 64512  }
   0x8   : > { %369 = sbr.rel (%p366_p2) target bundleno = 7162 (0x1bfa), region = 68  ;;  %2836 = vset.pattern.permute.xlu0 (!%p366_p2), %v2930_v1  ;;  %2834 = vset.pattern.permute.xlu1 (!%p366_p2), %v2930_v1  ;;  %v3063_v30 = vld [vmem:[%s3675_s3 + $0x1] ss:$0 sm:$0xff] (!%p366_p2)  ;;  %v3068_v31 = vld [vmem:[%s3675_s3] ss:$0 sm:$0xff] (!%p366_p2)  ;;  %v908_v61 = vld [vmem:[%s3677_s5 + $0x8] sm:$0xff] (!%p366_p2) }
   0x9   : > { %p407_p3 = scmp.lt.s32.totalorder (!%p366_p2), %s406_s25, 33  ;;  %2686 = vmatprep.subr.bf16.mxu0 (!%p366_p2), %v2932_v11  ;;  %2710 = vmatprep.subr.bf16.mxu1 (!%p366_p2), %v2932_v11  ;;  %v907_v60 = vld [vmem:[%s3677_s5] sm:$0xff] (!%p366_p2)  ;;  %vm2934_vm1 = vmmov (!%p366_p2), 0   ;;  %vm911_vm2 = vcmask (!%p366_p2), 261120   ;;  %s2935_s15 = smov (!%p366_p2), 64  }
   0xa   : > { %2387 = vmatprep.mubr.msk.f32.mxu0 (!%p366_p2), %vm688_vm0, %v3054_v21  ;;  %v2711_v62 = vpack.c.bf16 (!%p366_p2), %v908_v61, %v907_v60  ;;  %v2933_v60 = vmov (!%p366_p2), 0.0   ;;  %v3123_v61 = vld [vmem:[%s3673_s1] sm:$0xff] (!%p366_p2)  ;;  %s2936_s16 = smov (!%p366_p2), 32   ;;  %s2937_s19 = smov (!%p366_p2), 96  }
   0xb   : > { %2536 = vmatprep.mubr.msk.f32.mxu1 (!%p366_p2), %vm2934_vm1, %v2933_v60  ;;  %p412_p4 = scmp.lt.s32.totalorder (!%p366_p2), %s3012_s24, 1 }
   0xc   : > { %2712 = vmatpush3.bf16.msra.mxu1 (!%p366_p2), %v2711_v62  ;;  %v3128_v62 = vld [vmem:[%s3673_s1 + $0x18] sm:$0xff] (!%p366_p2) }
   0xd   : > { %2713 = vmatprep.subr.bf16.mxu1 (!%p366_p2), %v2932_v11 }
   0xf   : > { %s3686_s25 = smov (!%p407_p3, %s406_s25), 33  ;;  %s3688_s24 = smov (!%p412_p4, %s3012_s24), 1 }
  0x10   : > { %s2382_s11 = sshll.u32 %s3686_s25, 3  ;;  %s2383_s20 = sshll.u32 %s3688_s24, 3 }
  0x11   : > { %s3022_s28 = scalar_lea.vmem %s3672_s0, %s2382_s11  ;;  %s415_s25 = scalar_lea.vmem %s3684_s12, %s2383_s20 }
  0x12   : > { %v418_v2 = vld [vmem:[%s3022_s28 + $0x10] sm:$0xff]  ;;  %v416_v3 = vld [vmem:[%s3022_s28] sm:$0xff]  ;;  %v417_v5 = vld [vmem:[%s3022_s28 + $0x8] sm:$0xff] }
  0x13   : > { %550 = vperm.xlu0 %2836, %v418_v2   ;;  %542 = vperm.xlu1 %2834, %v416_v3   ;;  %v422_v4 = vld [vmem:[%s3022_s28 + $0x30] sm:$0xff]  ;;  %v419_v7 = vld [vmem:[%s3022_s28 + $0x18] sm:$0xff]  ;;  %v420_v9 = vld [vmem:[%s3022_s28 + $0x20] sm:$0xff] }
  0x14   : > { %v426_v6 = vld [vmem:[%s3022_s28 + $0x50] sm:$0xff]  ;;  %v421_v10 = vld [vmem:[%s3022_s28 + $0x28] sm:$0xff]  ;;  %v423_v13 = vld [vmem:[%s3022_s28 + $0x38] sm:$0xff] }
  0x15   : > { %v425_v12 = vld [vmem:[%s3022_s28 + $0x48] sm:$0xff]  ;;  %v424_v15 = vld [vmem:[%s3022_s28 + $0x40] sm:$0xff]  ;;  %v430_v16 = vld [vmem:[%s3022_s28 + $0x70] sm:$0xff] }
  0x16   : > { %v429_v14 = vld [vmem:[%s3022_s28 + $0x68] sm:$0xff]  ;;  %v432_v17 = vld [vmem:[%s3022_s28 + $0x80] sm:$0xff]  ;;  %v427_v18 = vld [vmem:[%s3022_s28 + $0x58] sm:$0xff] }
  0x17   : > { %566 = vperm.xlu0 %2836, %v422_v4   ;;  %546 = vperm.xlu1 %2834, %v417_v5   ;;  %v428_v19 = vld [vmem:[%s3022_s28 + $0x60] sm:$0xff]  ;;  %v431_v20 = vld [vmem:[%s3022_s28 + $0x78] sm:$0xff] }
  0x1b   : > { %582 = vperm.xlu0 %2836, %v426_v6   ;;  %2835 = vset.pattern.permute.xlu1 %v2931_v8 }
  0x1c   : > { %451 = vperm.xlu1 %2835, %v419_v7  }
  0x1f   : > { %2845 = vset.pattern.permute.xlu0 %v2931_v8 }
  0x20   : > { %436 = vperm.xlu0 %2845, %v416_v3   ;;  %2837 = vset.pattern.permute.xlu1 %v2930_v1 }
  0x21   : > { %554 = vperm.xlu1 %2837, %v419_v7  }
  0x24   : > { %441 = vperm.xlu0 %2845, %v417_v5  }
  0x25   : > { %2838 = vset.pattern.permute.xlu1 %v2931_v8 }
  0x26   : > { %456 = vperm.xlu1 %2838, %v420_v9  }
  0x28   : > { %446 = vperm.xlu0 %2845, %v418_v2  }
  0x2a   : > { %2839 = vset.pattern.permute.xlu1 %v2930_v1 }
  0x2b   : > { %558 = vperm.xlu1 %2839, %v420_v9  }
  0x2c   : > { %461 = vperm.xlu0 %2845, %v421_v10  }
  0x2f   : > { %562 = vperm.xlu1 %2839, %v421_v10  }
  0x30   : > { %466 = vperm.xlu0 %2845, %v422_v4  }
  0x33   : > { %2840 = vset.pattern.permute.xlu1 %v2931_v8 }
  0x34   : > { %481 = vperm.xlu0 %2845, %v425_v12   ;;  %471 = vperm.xlu1 %2840, %v423_v13  }
  0x38   : > { %486 = vperm.xlu0 %2845, %v426_v6   ;;  %2841 = vset.pattern.permute.xlu1 %v2930_v1 }
  0x39   : > { %570 = vperm.xlu1 %2841, %v423_v13  }
  0x3c   : > { %501 = vperm.xlu0 %2845, %v429_v14  }
  0x3d   : > { %2842 = vset.pattern.permute.xlu1 %v2931_v8 }
  0x3e   : > { %476 = vperm.xlu1 %2842, %v424_v15  }
  0x40   : > { %506 = vperm.xlu0 %2845, %v430_v16  }
  0x42   : > { %2843 = vset.pattern.permute.xlu1 %v2930_v1 }
  0x43   : > { %574 = vperm.xlu1 %2843, %v424_v15  }
  0x44   : > { %2850 = vset.pattern.permute.xlu0 %v2930_v1 }
  0x45   : > { %598 = vperm.xlu0 %2850, %v430_v16  }
  0x47   : > { %578 = vperm.xlu1 %2843, %v425_v12  }
  0x49   : > { %606 = vperm.xlu0 %2850, %v432_v17  }
  0x4b   : > { %2844 = vset.pattern.permute.xlu1 %v2931_v8 }
  0x4c   : > { %491 = vperm.xlu1 %2844, %v427_v18  }
  0x4d   : > { %2853 = vset.pattern.permute.xlu0 %v2931_v8 }
  0x50   : > { %2846 = vset.pattern.permute.xlu1 %v2930_v1 }
  0x51   : > { %586 = vperm.xlu1 %2846, %v427_v18  }
  0x55   : > { %2847 = vset.pattern.permute.xlu1 %v2931_v8 }
  0x56   : > { %496 = vperm.xlu1 %2847, %v428_v19  }
  0x5a   : > { %2848 = vset.pattern.permute.xlu1 %v2930_v1 }
  0x5b   : > { %590 = vperm.xlu1 %2848, %v428_v19  }
  0x5f   : > { %594 = vperm.xlu1 %2848, %v429_v14  }
  0x63   : > { %2849 = vset.pattern.permute.xlu1 %v2931_v8 }
  0x64   : > { %511 = vperm.xlu1 %2849, %v431_v20  }
  0x68   : > { %2851 = vset.pattern.permute.xlu1 %v2930_v1 }
  0x69   : > { %602 = vperm.xlu1 %2851, %v431_v20  }
  0x6d   : > { %2852 = vset.pattern.permute.xlu1 %v2931_v8 }
  0x6e   : > { %516 = vperm.xlu1 %2852, %v432_v17  }
  0x92   : > { %v543_v22 = vpop.permute.xlu1 %542  ;;  %v551_v23 = vpop.permute.xlu0 %550 }
  0x93   : > { %v613_v34 = vmul.f32 %v3063_v30, %v543_v22  ;;  %v615_v38 = vmul.f32 %v3063_v30, %v551_v23 }
  0x96   : > { %v547_v24 = vpop.permute.xlu1 %546  ;;  %v567_v25 = vpop.permute.xlu0 %566 }
  0x97   : > { %v614_v35 = vmul.f32 %v3063_v30, %v547_v24  ;;  %v619_v0 = vmul.f32 %v3063_v30, %v567_v25 }
  0x9a   : > { %v3058_v26 = vpop.permute.xlu0 %582 }
  0x9b   : > { %v452_v27 = vpop.permute.xlu1 %451  ;;  %v623_v23 = vmul.f32 %v3063_v30, %v3058_v26 }
  0x9c   : > { %v526_v43 = vmul.f32 %v3068_v31, %v452_v27 }
  0x9f   : > { %v437_v28 = vpop.permute.xlu0 %436 }
  0xa0   : > { %v555_v29 = vpop.permute.xlu1 %554  ;;  %v523_v32 = vmul.f32 %v3068_v31, %v437_v28 }
  0xa1   : > { %v616_v40 = vmul.f32 %v3063_v30, %v555_v29 }
  0xa2   : > { %v630_v39 = vadd.f32 %v613_v34, %v523_v32 }
  0xa3   : > { %v442_v33 = vpop.permute.xlu0 %441  ;;  %v633_v46 = vadd.f32 %v616_v40, %v526_v43 }
  0xa4   : > { %v524_v36 = vmul.f32 %v3068_v31, %v442_v33 }
  0xa5   : > { %v457_v37 = vpop.permute.xlu1 %456 }
  0xa6   : > { %v631_v41 = vadd.f32 %v614_v35, %v524_v36  ;;  %v527_v54 = vmul.f32 %v3068_v31, %v457_v37 }
  0xa7   : > { %v447_v42 = vpop.permute.xlu0 %446 }
  0xa8   : > { %v525_v44 = vmul.f32 %v3068_v31, %v447_v42  ;;  %v2687_v45 = vpack.c.bf16 %v631_v41, %v630_v39 }
  0xaa   : > { %v632_v47 = vadd.f32 %v615_v38, %v525_v44  ;;  %2688 = vmatpush1.bf16.msra.mxu0 %v2687_v45  ;;  %v559_v48 = vpop.permute.xlu1 %558 }
  0xab   : > { %2689 = vmatprep.subr.bf16.mxu0 %v2932_v11  ;;  %v462_v49 = vpop.permute.xlu0 %461  ;;  %v617_v51 = vmul.f32 %v3063_v30, %v559_v48 }
  0xac   : > { %v2690_v50 = vpack.c.bf16 %v633_v46, %v632_v47  ;;  %v528_v52 = vmul.f32 %v3068_v31, %v462_v49 }
  0xad   : > { %v634_v56 = vadd.f32 %v617_v51, %v527_v54 }
  0xae   : > { %2691 = vmatpush1.bf16.msra.mxu0 %v2690_v50  ;;  %v563_v53 = vpop.permute.xlu1 %562 }
  0xaf   : > { %v618_v55 = vmul.f32 %v3063_v30, %v563_v53  ;;  %2692 = vmatprep.subr.bf16.mxu0 %v2932_v11  ;;  %v467_v63 = vpop.permute.xlu0 %466 }
  0xb0   : > { %v529_v1 = vmul.f32 %v3068_v31, %v467_v63  ;;  %v3150_v63 = vld [vmem:[%s3673_s1 + $0x20] sm:$0xff] }
  0xb1   : > { %v635_v57 = vadd.f32 %v618_v55, %v528_v52 }
  0xb2   : > { %v636_v5 = vadd.f32 %v619_v0, %v529_v1  ;;  %v3155_v0 = vld [vmem:[%s3673_s1 + $0x38] sm:$0xff]  ;;  %v3163_v1 = vld [vmem:[%s3673_s1 + $0x30] sm:$0xff] }
  0xb3   : > { %v472_v58 = vpop.permute.xlu1 %471  ;;  %v2693_v59 = vpack.c.bf16 %v635_v57, %v634_v56  ;;  %v482_v12 = vpop.permute.xlu0 %481 }
  0xb4   : > { %v530_v3 = vmul.f32 %v3068_v31, %v472_v58  ;;  %v532_v14 = vmul.f32 %v3068_v31, %v482_v12  ;;  %v3228_v12 = vld [vmem:[%s3673_s1 + $0x80] sm:$0xff] }
  0xb5   : > { %2694 = vmatpush1.bf16.msra.mxu0 %v2693_v59 }
  0xb6   : > { %2695 = vmatprep.subr.bf16.mxu0 %v2932_v11 }
  0xb7   : > { %v487_v22 = vpop.permute.xlu0 %486 }
  0xb8   : > { %v571_v2 = vpop.permute.xlu1 %570  ;;  %v533_v24 = vmul.f32 %v3068_v31, %v487_v22  ;;  %v3285_v22 = vld [vmem:[%s3673_s1 + $0xd8] sm:$0xff] }
  0xb9   : > { %v620_v4 = vmul.f32 %v3063_v30, %v571_v2  ;;  %v3168_v2 = vld [vmem:[%s3673_s1 + $0x48] sm:$0xff] }
  0xba   : > { %v640_v29 = vadd.f32 %v623_v23, %v533_v24  ;;  %v3293_v23 = vld [vmem:[%s3673_s1 + $0xd0] sm:$0xff]  ;;  %v3298_v24 = vld [vmem:[%s3673_s1 + $0xe8] sm:$0xff] }
  0xbb   : > { %v637_v6 = vadd.f32 %v620_v4, %v530_v3  ;;  %v502_v35 = vpop.permute.xlu0 %501  ;;  %v3176_v3 = vld [vmem:[%s3673_s1 + $0x40] sm:$0xff]  ;;  %v3181_v4 = vld [vmem:[%s3673_s1 + $0x58] sm:$0xff] }
  0xbc   : > { %v536_v39 = vmul.f32 %v3068_v31, %v502_v35 }
  0xbd   : > { %v477_v7 = vpop.permute.xlu1 %476  ;;  %v2696_v8 = vpack.c.bf16 %v637_v6, %v636_v5  ;;  %v3189_v5 = vld [vmem:[%s3673_s1 + $0x50] sm:$0xff]  ;;  %v3194_v6 = vld [vmem:[%s3673_s1 + $0x68] sm:$0xff] }
  0xbe   : > { %v531_v15 = vmul.f32 %v3068_v31, %v477_v7  ;;  %v3202_v7 = vld [vmem:[%s3673_s1 + $0x60] sm:$0xff] }
  0xbf   : > { %2697 = vmatpush1.bf16.msra.mxu0 %v2696_v8  ;;  %v507_v38 = vpop.permute.xlu0 %506  ;;  %v3207_v8 = vld [vmem:[%s3673_s1 + $0x78] sm:$0xff] }
  0xc0   : > { %2698 = vmatprep.subr.bf16.mxu0 %v2932_v11  ;;  %v537_v47 = vmul.f32 %v3068_v31, %v507_v38 }
  0xc2   : > { %v575_v9 = vpop.permute.xlu1 %574 }
  0xc3   : > { %v621_v10 = vmul.f32 %v3063_v30, %v575_v9  ;;  %v3215_v9 = vld [vmem:[%s3673_s1 + $0x70] sm:$0xff] }
  0xc4   : > { %v599_v46 = vpop.permute.xlu0 %598 }
  0xc5   : > { %v638_v17 = vadd.f32 %v621_v10, %v531_v15  ;;  %v627_v48 = vmul.f32 %v3063_v30, %v599_v46  ;;  %v3220_v10 = vld [vmem:[%s3673_s1 + $0x88] sm:$0xff] }
  0xc6   : > { %v579_v13 = vpop.permute.xlu1 %578  ;;  %v3246_v15 = vld [vmem:[%s3673_s1 + $0xa8] sm:$0xff] }
  0xc7   : > { %v622_v16 = vmul.f32 %v3063_v30, %v579_v13  ;;  %v644_v52 = vadd.f32 %v627_v48, %v537_v47  ;;  %v3233_v13 = vld [vmem:[%s3673_s1 + $0x98] sm:$0xff] }
  0xc8   : > { %v607_v53 = vpop.permute.xlu0 %606 }
  0xc9   : > { %v639_v18 = vadd.f32 %v622_v16, %v532_v14  ;;  %v629_v57 = vmul.f32 %v3063_v30, %v607_v53  ;;  %v3241_v14 = vld [vmem:[%s3673_s1 + $0x90] sm:$0xff]  ;;  %v3254_v16 = vld [vmem:[%s3673_s1 + $0xa0] sm:$0xff] }
  0xcb   : > { %v492_v19 = vpop.permute.xlu1 %491  ;;  %v2699_v20 = vpack.c.bf16 %v639_v18, %v638_v17  ;;  %v3259_v17 = vld [vmem:[%s3673_s1 + $0xb8] sm:$0xff]  ;;  %v3267_v18 = vld [vmem:[%s3673_s1 + $0xb0] sm:$0xff] }
  0xcc   : > { %v534_v27 = vmul.f32 %v3068_v31, %v492_v19  ;;  %v3272_v19 = vld [vmem:[%s3673_s1 + $0xc8] sm:$0xff] }
  0xcd   : > { %2700 = vmatpush1.bf16.msra.mxu0 %v2699_v20  ;;  %v3280_v20 = vld [vmem:[%s3673_s1 + $0xc0] sm:$0xff] }
  0xce   : > { %2701 = vmatprep.subr.bf16.mxu0 %v2932_v11 }
  0xd0   : > { %v587_v25 = vpop.permute.xlu1 %586 }
  0xd1   : > { %v624_v28 = vmul.f32 %v3063_v30, %v587_v25  ;;  %v3306_v25 = vld [vmem:[%s3673_s1 + $0xe0] sm:$0xff] }
  0xd3   : > { %v641_v32 = vadd.f32 %v624_v28, %v534_v27  ;;  %v3311_v27 = vld [vmem:[%s3673_s1 + $0xf8] sm:$0xff]  ;;  %v3319_v28 = vld [vmem:[%s3673_s1 + $0xf0] sm:$0xff] }
  0xd5   : > { %v497_v33 = vpop.permute.xlu1 %496  ;;  %v2702_v34 = vpack.c.bf16 %v641_v32, %v640_v29  ;;  %v3324_v29 = vld [vmem:[%s3673_s1 + $0x108] sm:$0xff]  ;;  %v3332_v32 = vld [vmem:[%s3673_s1 + $0x100] sm:$0xff] }
  0xd6   : > { %v535_v40 = vmul.f32 %v3068_v31, %v497_v33  ;;  %v909_v33 = vld [vmem:[%s3677_s5 + $0x10] sm:$0xff] }
  0xd7   : > { %2703 = vmatpush1.bf16.msra.mxu0 %v2702_v34  ;;  %v910_v34 = vld [vmem:[%s3677_s5 + $0x18] sm:$0xff] }
  0xd8   : > { %2704 = vmatprep.subr.bf16.mxu0 %v2932_v11  ;;  %v2714_v35 = vpack.c.bf16 %v910_v34, %v909_v33 }
  0xda   : > { %v591_v36 = vpop.permute.xlu1 %590  ;;  %2715 = vmatpush3.bf16.msra.mxu1 %v2714_v35 }
  0xdb   : > { %v625_v37 = vmul.f32 %v3063_v30, %v591_v36  ;;  %2716 = vmatprep.subr.bf16.mxu1 %v2932_v11  ;;  %v3347_v36 = vld [vmem:[%s3676_s4] ss:$0 sm:$0xff] }
  0xdd   : > { %v642_v42 = vadd.f32 %v625_v37, %v535_v40 }
  0xde   : > { %v595_v26 = vpop.permute.xlu1 %594 }
  0xdf   : > { %v626_v41 = vmul.f32 %v3063_v30, %v595_v26 }
  0xe1   : > { %v643_v43 = vadd.f32 %v626_v41, %v536_v39 }
  0xe3   : > { %v512_v44 = vpop.permute.xlu1 %511  ;;  %v2705_v45 = vpack.c.bf16 %v643_v43, %v642_v42 }
  0xe4   : > { %v538_v50 = vmul.f32 %v3068_v31, %v512_v44 }
  0xe5   : > { %2706 = vmatpush1.bf16.msra.mxu0 %v2705_v45 }
  0xe6   : > { %2707 = vmatprep.subr.bf16.mxu0 %v2932_v11 }
  0xe8   : > { %v603_v49 = vpop.permute.xlu1 %602 }
  0xe9   : > { %v628_v51 = vmul.f32 %v3063_v30, %v603_v49  ;;  %v3137_v30 = vld [vmem:[%s3673_s1 + $0x10] sm:$0xff] }
  0xeb   : > { %v645_v54 = vadd.f32 %v628_v51, %v538_v50 }
  0xed   : > { %v517_v55 = vpop.permute.xlu1 %516  ;;  %v2708_v56 = vpack.c.bf16 %v645_v54, %v644_v52 }
  0xee   : > { %v539_v58 = vmul.f32 %v3068_v31, %v517_v55  ;;  %v3142_v31 = vld [vmem:[%s3673_s1 + $0x28] sm:$0xff] }
  0xef   : > { %2709 = vmatpush1.bf16.msra.mxu0 %v2708_v56 }
  0xf0   : > { %v646_v59 = vadd.f32 %v629_v57, %v539_v58  ;;  %772 = vmatprep.subr.mxu0 %v2933_v60 }
  0xf3   : > { %773 = vmatpush1.msra.mxu0 %v646_v59 }
  0xf4   : > { %805 = vmatmul.mubr.f32.vlgmr.msra.gmra.mrb[0].mxu0 %v3123_v61  ;;  %2740 = vmatprep.subr.bf16.mxu0 %v2932_v11 }
  0xf5   : > { %2388 = vmatprep.mubr.msk.f32.mxu0 %vm688_vm0, %v3128_v62 }
  0xf8   : > { %810 = vmatmul.mubr.f32.gmra.mrb[2].mxu0 %v3137_v30 }
  0xf9   : > { %2389 = vmatprep.mubr.msk.f32.mxu0 %vm688_vm0, %v3142_v31 }
  0xfc   : > { %815 = vmatmul.mubr.f32.gmra.mrb[4].mxu0 %v3150_v63 }
  0xfd   : > { %2390 = vmatprep.mubr.msk.f32.mxu0 %vm688_vm0, %v3155_v0 }
 0x100   : > { %820 = vmatmul.mubr.f32.gmra.mrb[6].mxu0 %v3163_v1 }
 0x101   : > { %2391 = vmatprep.mubr.msk.f32.mxu0 %vm688_vm0, %v3168_v2 }
 0x104   : > { %825 = vmatmul.mubr.f32.gmra.mrb[8].mxu0 %v3176_v3 }
 0x105   : > { %2392 = vmatprep.mubr.msk.f32.mxu0 %vm688_vm0, %v3181_v4 }
 0x108   : > { %830 = vmatmul.mubr.f32.gmra.mrb[10].mxu0 %v3189_v5 }
 0x109   : > { %2393 = vmatprep.mubr.msk.f32.mxu0 %vm688_vm0, %v3194_v6 }
 0x10c   : > { %835 = vmatmul.mubr.f32.gmra.mrb[12].mxu0 %v3202_v7 }
 0x10d   : > { %2394 = vmatprep.mubr.msk.f32.mxu0 %vm688_vm0, %v3207_v8 }
 0x110   : > { %840 = vmatmul.mubr.f32.gmra.mrb[14].mxu0 %v3215_v9 }
 0x111   : > { %2395 = vmatprep.mubr.msk.f32.mxu0 %vm688_vm0, %v3220_v10 }
 0x114   : > { %845 = vmatmul.mubr.f32.gmra.mrb[16].mxu0 %v3228_v12 }
 0x115   : > { %2396 = vmatprep.mubr.msk.f32.mxu0 %vm688_vm0, %v3233_v13 }
 0x118   : > { %850 = vmatmul.mubr.f32.gmra.mrb[18].mxu0 %v3241_v14 }
 0x119   : > { %2397 = vmatprep.mubr.msk.f32.mxu0 %vm688_vm0, %v3246_v15 }
 0x11c   : > { %855 = vmatmul.mubr.f32.gmra.mrb[20].mxu0 %v3254_v16 }
 0x11d   : > { %2398 = vmatprep.mubr.msk.f32.mxu0 %vm688_vm0, %v3259_v17 }
 0x120   : > { %860 = vmatmul.mubr.f32.gmra.mrb[22].mxu0 %v3267_v18 }
 0x121   : > { %2399 = vmatprep.mubr.msk.f32.mxu0 %vm688_vm0, %v3272_v19 }
 0x124   : > { %865 = vmatmul.mubr.f32.gmra.mrb[24].mxu0 %v3280_v20 }
 0x125   : > { %2400 = vmatprep.mubr.msk.f32.mxu0 %vm688_vm0, %v3285_v22 }
 0x128   : > { %870 = vmatmul.mubr.f32.gmra.mrb[26].mxu0 %v3293_v23 }
 0x129   : > { %2401 = vmatprep.mubr.msk.f32.mxu0 %vm688_vm0, %v3298_v24 }
 0x12c   : > { %875 = vmatmul.mubr.f32.gmra.mrb[28].mxu0 %v3306_v25 }
 0x12d   : > { %2402 = vmatprep.mubr.msk.f32.mxu0 %vm688_vm0, %v3311_v27 }
 0x130   : > { %880 = vmatmul.mubr.f32.gmra.mrb[30].mxu0 %v3319_v28 }
 0x131   : > { %2403 = vmatprep.mubr.msk.f32.mxu0 %vm688_vm0, %v3324_v29 }
 0x134   : > { %885 = vmatmul.mubr.f32.gmra.mrb[32].mxu0 %v3332_v32 }
 0x1c7   : > { %v806_v37 = vpop.f32.mrb[0].mxu0 }
 0x1c8   : > { %v807_v38 = vadd.f32 %v3347_v36, %v806_v37  ;;  %v808_v26 = vpop.f32.mrb[1].mxu0 }
 0x1ca   : > { %v890_v39 = vmax.f32 %v807_v38, 0.0 }
 0x1cb   : > { %v811_v40 = vpop.f32.mrb[2].mxu0 }
 0x1cc   : > { %v812_v41 = vadd.f32 %v3347_v36, %v811_v40  ;;  %v813_v42 = vpop.f32.mrb[3].mxu0  ;;  %2537 = vmatmul.mubr.msk.f32.vlgmr.msra.gmra.mrb[0].mxu1 %vm911_vm2, %v890_v39 }
 0x1cd   : > { %2539 = vmatprep.mubr.msk.f32.mxu1 %vm2934_vm1, %v2933_v60 }
 0x1ce   : > { %v891_v43 = vmax.f32 %v812_v41, 0.0 }
 0x1cf   : > { %v816_v44 = vpop.f32.mrb[4].mxu0 }
 0x1d0   : > { %v817_v45 = vadd.f32 %v3347_v36, %v816_v44  ;;  %v818_v46 = vpop.f32.mrb[5].mxu0  ;;  %2540 = vmatmul.mubr.msk.f32.gmra.mrb[2].mxu1 %vm911_vm2, %v891_v43 }
 0x1d1   : > { %2542 = vmatprep.mubr.msk.f32.mxu1 %vm2934_vm1, %v2933_v60 }
 0x1d2   : > { %v892_v47 = vmax.f32 %v817_v45, 0.0 }
 0x1d3   : > { %v821_v48 = vpop.f32.mrb[6].mxu0 }
 0x1d4   : > { %v822_v49 = vadd.f32 %v3347_v36, %v821_v48  ;;  %v823_v50 = vpop.f32.mrb[7].mxu0  ;;  %2543 = vmatmul.mubr.msk.f32.gmra.mrb[4].mxu1 %vm911_vm2, %v892_v47 }
 0x1d5   : > { %2545 = vmatprep.mubr.msk.f32.mxu1 %vm2934_vm1, %v2933_v60 }
 0x1d6   : > { %v893_v51 = vmax.f32 %v822_v49, 0.0 }
 0x1d7   : > { %v826_v52 = vpop.f32.mrb[8].mxu0 }
 0x1d8   : > { %v827_v53 = vadd.f32 %v3347_v36, %v826_v52  ;;  %v828_v54 = vpop.f32.mrb[9].mxu0  ;;  %2546 = vmatmul.mubr.msk.f32.gmra.mrb[6].mxu1 %vm911_vm2, %v893_v51 }
 0x1d9   : > { %2548 = vmatprep.mubr.msk.f32.mxu1 %vm2934_vm1, %v2933_v60 }
 0x1da   : > { %v894_v55 = vmax.f32 %v827_v53, 0.0 }
 0x1db   : > { %v831_v56 = vpop.f32.mrb[10].mxu0 }
 0x1dc   : > { %v832_v57 = vadd.f32 %v3347_v36, %v831_v56  ;;  %v833_v58 = vpop.f32.mrb[11].mxu0  ;;  %2549 = vmatmul.mubr.msk.f32.gmra.mrb[8].mxu1 %vm911_vm2, %v894_v55 }
 0x1dd   : > { %2551 = vmatprep.mubr.msk.f32.mxu1 %vm2934_vm1, %v2933_v60 }
 0x1de   : > { %v895_v59 = vmax.f32 %v832_v57, 0.0 }
 0x1df   : > { %v836_v33 = vpop.f32.mrb[12].mxu0 }
 0x1e0   : > { %v837_v34 = vadd.f32 %v3347_v36, %v836_v33  ;;  %v838_v35 = vpop.f32.mrb[13].mxu0  ;;  %2552 = vmatmul.mubr.msk.f32.gmra.mrb[10].mxu1 %vm911_vm2, %v895_v59 }
 0x1e1   : > { %2554 = vmatprep.mubr.msk.f32.mxu1 %vm2934_vm1, %v2933_v60 }
 0x1e2   : > { %v896_v37 = vmax.f32 %v837_v34, 0.0 }
 0x1e3   : > { %v841_v38 = vpop.f32.mrb[14].mxu0 }
 0x1e4   : > { %v842_v26 = vadd.f32 %v3347_v36, %v841_v38  ;;  %v843_v39 = vpop.f32.mrb[15].mxu0  ;;  %2555 = vmatmul.mubr.msk.f32.gmra.mrb[12].mxu1 %vm911_vm2, %v896_v37 }
 0x1e5   : > { %2557 = vmatprep.mubr.msk.f32.mxu1 %vm2934_vm1, %v2933_v60 }
 0x1e6   : > { %v897_v40 = vmax.f32 %v842_v26, 0.0 }
 0x1e7   : > { %v846_v41 = vpop.f32.mrb[16].mxu0 }
 0x1e8   : > { %v847_v42 = vadd.f32 %v3347_v36, %v846_v41  ;;  %v848_v43 = vpop.f32.mrb[17].mxu0  ;;  %2558 = vmatmul.mubr.msk.f32.gmra.mrb[14].mxu1 %vm911_vm2, %v897_v40 }
 0x1e9   : > { %2560 = vmatprep.mubr.msk.f32.mxu1 %vm2934_vm1, %v2933_v60 }
 0x1ea   : > { %v898_v44 = vmax.f32 %v847_v42, 0.0 }
 0x1eb   : > { %v851_v45 = vpop.f32.mrb[18].mxu0 }
 0x1ec   : > { %v852_v46 = vadd.f32 %v3347_v36, %v851_v45  ;;  %v853_v47 = vpop.f32.mrb[19].mxu0  ;;  %2561 = vmatmul.mubr.msk.f32.gmra.mrb[16].mxu1 %vm911_vm2, %v898_v44 }
 0x1ed   : > { %2563 = vmatprep.mubr.msk.f32.mxu1 %vm2934_vm1, %v2933_v60 }
 0x1ee   : > { %v899_v48 = vmax.f32 %v852_v46, 0.0 }
 0x1ef   : > { %v856_v49 = vpop.f32.mrb[20].mxu0 }
 0x1f0   : > { %v857_v50 = vadd.f32 %v3347_v36, %v856_v49  ;;  %v858_v51 = vpop.f32.mrb[21].mxu0  ;;  %2564 = vmatmul.mubr.msk.f32.gmra.mrb[18].mxu1 %vm911_vm2, %v899_v48 }
 0x1f1   : > { %2566 = vmatprep.mubr.msk.f32.mxu1 %vm2934_vm1, %v2933_v60 }
 0x1f2   : > { %v900_v52 = vmax.f32 %v857_v50, 0.0 }
 0x1f3   : > { %v861_v53 = vpop.f32.mrb[22].mxu0 }
 0x1f4   : > { %v862_v54 = vadd.f32 %v3347_v36, %v861_v53  ;;  %v863_v55 = vpop.f32.mrb[23].mxu0  ;;  %2567 = vmatmul.mubr.msk.f32.gmra.mrb[20].mxu1 %vm911_vm2, %v900_v52 }
 0x1f5   : > { %2569 = vmatprep.mubr.msk.f32.mxu1 %vm2934_vm1, %v2933_v60 }
 0x1f6   : > { %v901_v56 = vmax.f32 %v862_v54, 0.0 }
 0x1f7   : > { %v866_v57 = vpop.f32.mrb[24].mxu0 }
 0x1f8   : > { %v867_v58 = vadd.f32 %v3347_v36, %v866_v57  ;;  %v868_v59 = vpop.f32.mrb[25].mxu0  ;;  %2570 = vmatmul.mubr.msk.f32.gmra.mrb[22].mxu1 %vm911_vm2, %v901_v56 }
 0x1f9   : > { %2572 = vmatprep.mubr.msk.f32.mxu1 %vm2934_vm1, %v2933_v60 }
 0x1fa   : > { %v902_v33 = vmax.f32 %v867_v58, 0.0 }
 0x1fb   : > { %v871_v34 = vpop.f32.mrb[26].mxu0 }
 0x1fc   : > { %v872_v35 = vadd.f32 %v3347_v36, %v871_v34  ;;  %v873_v37 = vpop.f32.mrb[27].mxu0  ;;  %2573 = vmatmul.mubr.msk.f32.gmra.mrb[24].mxu1 %vm911_vm2, %v902_v33 }
 0x1fd   : > { %2575 = vmatprep.mubr.msk.f32.mxu1 %vm2934_vm1, %v2933_v60 }
 0x1fe   : > { %v903_v38 = vmax.f32 %v872_v35, 0.0 }
 0x1ff   : > { %v876_v26 = vpop.f32.mrb[28].mxu0 }
 0x200   : > { %v877_v39 = vadd.f32 %v3347_v36, %v876_v26  ;;  %v878_v40 = vpop.f32.mrb[29].mxu0  ;;  %2576 = vmatmul.mubr.msk.f32.gmra.mrb[26].mxu1 %vm911_vm2, %v903_v38 }
 0x201   : > { %2578 = vmatprep.mubr.msk.f32.mxu1 %vm2934_vm1, %v2933_v60 }
 0x202   : > { %v904_v41 = vmax.f32 %v877_v39, 0.0 }
 0x203   : > { %v881_v42 = vpop.f32.mrb[30].mxu0 }
 0x204   : > { %v882_v43 = vadd.f32 %v3347_v36, %v881_v42  ;;  %v883_v44 = vpop.f32.mrb[31].mxu0  ;;  %2579 = vmatmul.mubr.msk.f32.gmra.mrb[28].mxu1 %vm911_vm2, %v904_v41 }
 0x205   : > { %2581 = vmatprep.mubr.msk.f32.mxu1 %vm2934_vm1, %v2933_v60 }
 0x206   : > { %v905_v45 = vmax.f32 %v882_v43, 0.0 }
 0x207   : > { %v886_v46 = vpop.f32.mrb[32].mxu0 }
 0x208   : > { %v887_v47 = vadd.f32 %v3347_v36, %v886_v46  ;;  %2582 = vmatmul.mubr.msk.f32.gmra.mrb[30].mxu1 %vm911_vm2, %v905_v45  ;;  %v888_v48 = vpop.f32.mrb[33].mxu0 }
 0x209   : > { %2584 = vmatprep.mubr.msk.f32.mxu1 %vm2934_vm1, %v2933_v60 }
 0x20a   : > { %v906_v49 = vmax.f32 %v887_v47, 0.0 }
 0x20c   : > { %2585 = vmatmul.mubr.msk.f32.gmra.mrb[32].mxu1 %vm911_vm2, %v906_v49 }
 0x20d   : > { %2422 = vmatprep.mubr.msk.f32.mxu1 %vm688_vm0, %v3054_v21 }
 0x29f   : > { %v1029_v50 = vpop.f32.mrb[0].mxu1 }
 0x2a0   : > { %v2538_v51 = vpop.f32.mrb[1].mxu1 }
 0x2a3   : > { %v1034_v52 = vpop.f32.mrb[2].mxu1 }
 0x2a4   : > { %v2717_v53 = vpack.c.bf16 %v1034_v52, %v1029_v50  ;;  %v2541_v54 = vpop.f32.mrb[3].mxu1 }
 0x2a6   : > { %2718 = vmatpush1.bf16.msra.mxu1 %v2717_v53 }
 0x2a7   : > { %v1039_v55 = vpop.f32.mrb[4].mxu1  ;;  %2719 = vmatprep.subr.bf16.mxu1 %v2932_v11 }
 0x2a8   : > { %v2544_v36 = vpop.f32.mrb[5].mxu1 }
 0x2ab   : > { %v1044_v56 = vpop.f32.mrb[6].mxu1 }
 0x2ac   : > { %v2720_v57 = vpack.c.bf16 %v1044_v56, %v1039_v55  ;;  %v2547_v58 = vpop.f32.mrb[7].mxu1 }
 0x2ae   : > { %2721 = vmatpush1.bf16.msra.mxu1 %v2720_v57 }
 0x2af   : > { %v1049_v59 = vpop.f32.mrb[8].mxu1  ;;  %2722 = vmatprep.subr.bf16.mxu1 %v2932_v11 }
 0x2b0   : > { %v2550_v33 = vpop.f32.mrb[9].mxu1 }
 0x2b3   : > { %v1054_v34 = vpop.f32.mrb[10].mxu1 }
 0x2b4   : > { %v2723_v21 = vpack.c.bf16 %v1054_v34, %v1049_v59  ;;  %v2553_v35 = vpop.f32.mrb[11].mxu1 }
 0x2b6   : > { %2724 = vmatpush1.bf16.msra.mxu1 %v2723_v21 }
 0x2b7   : > { %v1059_v37 = vpop.f32.mrb[12].mxu1  ;;  %2725 = vmatprep.subr.bf16.mxu1 %v2932_v11 }
 0x2b8   : > { %v2556_v38 = vpop.f32.mrb[13].mxu1 }
 0x2bb   : > { %v1064_v26 = vpop.f32.mrb[14].mxu1 }
 0x2bc   : > { %v2726_v39 = vpack.c.bf16 %v1064_v26, %v1059_v37  ;;  %v2559_v40 = vpop.f32.mrb[15].mxu1 }
 0x2be   : > { %2727 = vmatpush1.bf16.msra.mxu1 %v2726_v39 }
 0x2bf   : > { %v1069_v41 = vpop.f32.mrb[16].mxu1  ;;  %2728 = vmatprep.subr.bf16.mxu1 %v2932_v11 }
 0x2c0   : > { %v2562_v42 = vpop.f32.mrb[17].mxu1 }
 0x2c3   : > { %v1074_v43 = vpop.f32.mrb[18].mxu1 }
 0x2c4   : > { %v2729_v44 = vpack.c.bf16 %v1074_v43, %v1069_v41  ;;  %v2565_v45 = vpop.f32.mrb[19].mxu1 }
 0x2c6   : > { %2730 = vmatpush1.bf16.msra.mxu1 %v2729_v44 }
 0x2c7   : > { %v1079_v46 = vpop.f32.mrb[20].mxu1  ;;  %2731 = vmatprep.subr.bf16.mxu1 %v2932_v11 }
 0x2c8   : > { %v2568_v47 = vpop.f32.mrb[21].mxu1 }
 0x2cb   : > { %v1084_v48 = vpop.f32.mrb[22].mxu1 }
 0x2cc   : > { %v2732_v49 = vpack.c.bf16 %v1084_v48, %v1079_v46  ;;  %v2571_v50 = vpop.f32.mrb[23].mxu1 }
 0x2ce   : > { %2733 = vmatpush1.bf16.msra.mxu1 %v2732_v49 }
 0x2cf   : > { %v1089_v51 = vpop.f32.mrb[24].mxu1  ;;  %2734 = vmatprep.subr.bf16.mxu1 %v2932_v11 }
 0x2d0   : > { %v2574_v52 = vpop.f32.mrb[25].mxu1 }
 0x2d3   : > { %v1094_v53 = vpop.f32.mrb[26].mxu1 }
 0x2d4   : > { %v2735_v54 = vpack.c.bf16 %v1094_v53, %v1089_v51  ;;  %v2577_v55 = vpop.f32.mrb[27].mxu1 }
 0x2d6   : > { %2736 = vmatpush1.bf16.msra.mxu1 %v2735_v54 }
 0x2d7   : > { %v1099_v36 = vpop.f32.mrb[28].mxu1  ;;  %2737 = vmatprep.subr.bf16.mxu1 %v2932_v11 }
 0x2d8   : > { %v2580_v56 = vpop.f32.mrb[29].mxu1 }
 0x2db   : > { %v1104_v57 = vpop.f32.mrb[30].mxu1 }
 0x2dc   : > { %v2738_v58 = vpack.c.bf16 %v1104_v57, %v1099_v36  ;;  %v2583_v59 = vpop.f32.mrb[31].mxu1 }
 0x2de   : > { %2739 = vmatpush1.bf16.msra.mxu1 %v2738_v58 }
 0x2df   : > { %v1109_v33 = vpop.f32.mrb[32].mxu1  ;;  %1152 = vmatprep.subr.mxu1 %v2933_v60 }
 0x2e0   : > { %v2586_v34 = vpop.f32.mrb[33].mxu1 }
 0x2e2   : > { %1153 = vmatpush1.msra.mxu1 %v1109_v33 }
 0x2e3   : > { %1185 = vmatmul.mubr.f32.vlgmr.msra.gmra.mrb[34].mxu1 %v3123_v61  ;;  %2794 = vmatprep.subr.bf16.mxu1 %v2932_v11  ;;  %v1288_v61 = vld [vmem:[%s3674_s2 + $0x8] sm:$0xff] }
 0x2e4   : > { %2423 = vmatprep.mubr.msk.f32.mxu1 %vm688_vm0, %v3128_v62  ;;  %2439 = vmatprep.mubr.msk.f32.mxu0 %vm688_vm0, %v1288_v61  ;;  %v3484_v62 = vld [vmem:[%s3678_s6] ss:$0 sm:$0xff] }
 0x2e7   : > { %1190 = vmatmul.mubr.f32.gmra.mrb[36].mxu1 %v3137_v30 }
 0x2e8   : > { %2424 = vmatprep.mubr.msk.f32.mxu1 %vm688_vm0, %v3142_v31 }
 0x2eb   : > { %1195 = vmatmul.mubr.f32.gmra.mrb[38].mxu1 %v3150_v63 }
 0x2ec   : > { %2425 = vmatprep.mubr.msk.f32.mxu1 %vm688_vm0, %v3155_v0 }
 0x2ef   : > { %1200 = vmatmul.mubr.f32.gmra.mrb[40].mxu1 %v3163_v1 }
 0x2f0   : > { %2426 = vmatprep.mubr.msk.f32.mxu1 %vm688_vm0, %v3168_v2 }
 0x2f3   : > { %1205 = vmatmul.mubr.f32.gmra.mrb[42].mxu1 %v3176_v3 }
 0x2f4   : > { %2427 = vmatprep.mubr.msk.f32.mxu1 %vm688_vm0, %v3181_v4 }
 0x2f7   : > { %1210 = vmatmul.mubr.f32.gmra.mrb[44].mxu1 %v3189_v5 }
 0x2f8   : > { %2428 = vmatprep.mubr.msk.f32.mxu1 %vm688_vm0, %v3194_v6 }
 0x2fb   : > { %1215 = vmatmul.mubr.f32.gmra.mrb[46].mxu1 %v3202_v7 }
 0x2fc   : > { %2429 = vmatprep.mubr.msk.f32.mxu1 %vm688_vm0, %v3207_v8 }
 0x2ff   : > { %1220 = vmatmul.mubr.f32.gmra.mrb[48].mxu1 %v3215_v9 }
 0x300   : > { %2430 = vmatprep.mubr.msk.f32.mxu1 %vm688_vm0, %v3220_v10 }
 0x303   : > { %1225 = vmatmul.mubr.f32.gmra.mrb[50].mxu1 %v3228_v12 }
 0x304   : > { %2431 = vmatprep.mubr.msk.f32.mxu1 %vm688_vm0, %v3233_v13 }
 0x307   : > { %1230 = vmatmul.mubr.f32.gmra.mrb[52].mxu1 %v3241_v14 }
 0x308   : > { %2432 = vmatprep.mubr.msk.f32.mxu1 %vm688_vm0, %v3246_v15 }
 0x30b   : > { %1235 = vmatmul.mubr.f32.gmra.mrb[54].mxu1 %v3254_v16 }
 0x30c   : > { %2433 = vmatprep.mubr.msk.f32.mxu1 %vm688_vm0, %v3259_v17 }
 0x30f   : > { %1240 = vmatmul.mubr.f32.gmra.mrb[56].mxu1 %v3267_v18 }
 0x310   : > { %2434 = vmatprep.mubr.msk.f32.mxu1 %vm688_vm0, %v3272_v19 }
 0x313   : > { %1245 = vmatmul.mubr.f32.gmra.mrb[58].mxu1 %v3280_v20 }
 0x314   : > { %2435 = vmatprep.mubr.msk.f32.mxu1 %vm688_vm0, %v3285_v22 }
 0x317   : > { %1250 = vmatmul.mubr.f32.gmra.mrb[60].mxu1 %v3293_v23 }
 0x318   : > { %2436 = vmatprep.mubr.msk.f32.mxu1 %vm688_vm0, %v3298_v24 }
 0x31b   : > { %1255 = vmatmul.mubr.f32.gmra.mrb[62].mxu1 %v3306_v25 }
 0x31c   : > { %2437 = vmatprep.mubr.msk.f32.mxu1 %vm688_vm0, %v3311_v27 }
 0x31f   : > { %1260 = vmatmul.mubr.f32.gmra.mrb[64].mxu1 %v3319_v28 }
 0x320   : > { %2438 = vmatprep.mubr.msk.f32.mxu1 %vm688_vm0, %v3324_v29 }
 0x323   : > { %1265 = vmatmul.mubr.f32.gmra.mrb[66].mxu1 %v3332_v32 }
 0x324   : > { %2650 = vmatprep.mubr.msk.f32.mxu1 %vm2934_vm1, %v2933_v60 }
 0x3b6   : > { %v1186_v30 = vpop.f32.mrb[34].mxu1 }
 0x3b7   : > { %v1188_v31 = vpop.f32.mrb[35].mxu1  ;;  %v1187_v63 = vadd.f32 %v3484_v62, %v1186_v30 }
 0x3b9   : > { %v1270_v3 = vmax.f32 %v1187_v63, 0.0 }
 0x3ba   : > { %v1191_v0 = vpop.f32.mrb[36].mxu1 }
 0x3bb   : > { %v1192_v1 = vadd.f32 %v3484_v62, %v1191_v0  ;;  %v1193_v2 = vpop.f32.mrb[37].mxu1 }
 0x3bd   : > { %v1271_v4 = vmax.f32 %v1192_v1, 0.0 }
 0x3be   : > { %v1196_v5 = vpop.f32.mrb[38].mxu1 }
 0x3bf   : > { %v2741_v6 = vpack.c.bf16 %v1271_v4, %v1270_v3  ;;  %v1198_v7 = vpop.f32.mrb[39].mxu1  ;;  %v1197_v8 = vadd.f32 %v3484_v62, %v1196_v5 }
 0x3c1   : > { %2742 = vmatpush1.bf16.msra.mxu0 %v2741_v6  ;;  %v1272_v13 = vmax.f32 %v1197_v8, 0.0 }
 0x3c2   : > { %v1201_v9 = vpop.f32.mrb[40].mxu1  ;;  %2743 = vmatprep.subr.bf16.mxu0 %v2932_v11 }
 0x3c3   : > { %v1202_v10 = vadd.f32 %v3484_v62, %v1201_v9  ;;  %v1203_v12 = vpop.f32.mrb[41].mxu1 }
 0x3c4   : > { %v1362_v12 = vld [vmem:[%s3679_s7] sm:$0xff] }
 0x3c5   : > { %v1273_v14 = vmax.f32 %v1202_v10, 0.0 }
 0x3c6   : > { %v1206_v15 = vpop.f32.mrb[42].mxu1 }
 0x3c7   : > { %v2744_v16 = vpack.c.bf16 %v1273_v14, %v1272_v13  ;;  %v1208_v17 = vpop.f32.mrb[43].mxu1  ;;  %v1207_v18 = vadd.f32 %v3484_v62, %v1206_v15  ;;  %v1363_v13 = vld [vmem:[%s3679_s7 + $0x8] sm:$0xff]  ;;  %v1287_v15 = vld [vmem:[%s3674_s2] sm:$0xff] }
 0x3c8   : > { %v1365_v17 = vld [vmem:[%s3679_s7 + $0x18] sm:$0xff] }
 0x3c9   : > { %2745 = vmatpush1.bf16.msra.mxu0 %v2744_v16  ;;  %v1274_v23 = vmax.f32 %v1207_v18, 0.0  ;;  %v2765_v16 = vpack.c.bf16 %v1363_v13, %v1362_v12 }
 0x3ca   : > { %v1211_v19 = vpop.f32.mrb[44].mxu1  ;;  %2746 = vmatprep.subr.bf16.mxu0 %v2932_v11 }
 0x3cb   : > { %v1212_v20 = vadd.f32 %v3484_v62, %v1211_v19  ;;  %v1213_v22 = vpop.f32.mrb[45].mxu1  ;;  %v1446_v19 = vld [vmem:[%s3680_s8] sm:$0xff] }
 0x3cd   : > { %v1275_v24 = vmax.f32 %v1212_v20, 0.0  ;;  %v1447_v20 = vld [vmem:[%s3680_s8 + $0x8] sm:$0xff] }
 0x3ce   : > { %v1216_v25 = vpop.f32.mrb[46].mxu1  ;;  %v3537_v22 = vpack.c.bf16 %v1447_v20, %v1446_v19 }
 0x3cf   : > { %v2747_v27 = vpack.c.bf16 %v1275_v24, %v1274_v23  ;;  %v1218_v28 = vpop.f32.mrb[47].mxu1  ;;  %v1217_v29 = vadd.f32 %v3484_v62, %v1216_v25  ;;  %v1448_v23 = vld [vmem:[%s3680_s8 + $0x10] sm:$0xff]  ;;  %v1449_v24 = vld [vmem:[%s3680_s8 + $0x18] sm:$0xff] }
 0x3d0   : > { %2796 = vmatpush3.bf16.msra.mxu1 %v3537_v22  ;;  %v3547_v25 = vpack.c.bf16 %v1449_v24, %v1448_v23 }
 0x3d1   : > { %2748 = vmatpush1.bf16.msra.mxu0 %v2747_v27  ;;  %v1276_v37 = vmax.f32 %v1217_v29, 0.0  ;;  %2797 = vmatprep.subr.bf16.mxu1 %v2932_v11  ;;  %v1523_v29 = vlaneseq }
 0x3d2   : > { %v1221_v32 = vpop.f32.mrb[48].mxu1  ;;  %2749 = vmatprep.subr.bf16.mxu0 %v2932_v11 }
 0x3d3   : > { %v1222_v21 = vadd.f32 %v3484_v62, %v1221_v32  ;;  %v1223_v35 = vpop.f32.mrb[49].mxu1  ;;  %v1524_v32 = vshrl.u32 %v1523_v29, 7 }
 0x3d4   : > { %2799 = vmatpush3.bf16.msra.mxu1 %v3547_v25 }
 0x3d5   : > { %v1277_v38 = vmax.f32 %v1222_v21, 0.0  ;;  %2806 = vmatprep.subr.bf16.mxu1 %v2932_v11  ;;  %v2440_v21 = vld [vmem:[%s3681_s9] ss:$0 sm:$0xff]  ;;  %v1629_v35 = vsub.s32 1, %v1524_v32 }
 0x3d6   : > { %v1226_v26 = vpop.f32.mrb[50].mxu1 }
 0x3d7   : > { %v2750_v39 = vpack.c.bf16 %v1277_v38, %v1276_v37  ;;  %v1228_v40 = vpop.f32.mrb[51].mxu1  ;;  %v1227_v41 = vadd.f32 %v3484_v62, %v1226_v26  ;;  %v1734_v37 = vsub.s32 2, %v1524_v32  ;;  %v1839_v38 = vsub.s32 3, %v1524_v32 }
 0x3d8   : > { %v2049_v40 = vsub.s32 5, %v1524_v32 }
 0x3d9   : > { %2751 = vmatpush1.bf16.msra.mxu0 %v2750_v39  ;;  %v1278_v45 = vmax.f32 %v1227_v41, 0.0  ;;  %v1944_v39 = vsub.s32 4, %v1524_v32  ;;  %v2154_v41 = vsub.s32 6, %v1524_v32 }
 0x3da   : > { %v1231_v42 = vpop.f32.mrb[52].mxu1  ;;  %2752 = vmatprep.subr.bf16.mxu0 %v2932_v11 }
 0x3db   : > { %v1232_v43 = vadd.f32 %v3484_v62, %v1231_v42  ;;  %v1233_v44 = vpop.f32.mrb[53].mxu1  ;;  %v2259_v42 = vsub.s32 7, %v1524_v32 }
 0x3dd   : > { %v1279_v46 = vmax.f32 %v1232_v43, 0.0 }
 0x3de   : > { %v1236_v47 = vpop.f32.mrb[54].mxu1 }
 0x3df   : > { %v2753_v48 = vpack.c.bf16 %v1279_v46, %v1278_v45  ;;  %v1238_v49 = vpop.f32.mrb[55].mxu1  ;;  %v1237_v50 = vadd.f32 %v3484_v62, %v1236_v47  ;;  %v1525_v45 = vsub.s32 0, %v1524_v32 }
 0x3e1   : > { %2754 = vmatpush1.bf16.msra.mxu0 %v2753_v48  ;;  %v1280_v54 = vmax.f32 %v1237_v50, 0.0 }
 0x3e2   : > { %v1241_v51 = vpop.f32.mrb[56].mxu1  ;;  %2755 = vmatprep.subr.bf16.mxu0 %v2932_v11 }
 0x3e3   : > { %v1242_v52 = vadd.f32 %v3484_v62, %v1241_v51  ;;  %v1243_v53 = vpop.f32.mrb[57].mxu1 }
 0x3e5   : > { %v1281_v55 = vmax.f32 %v1242_v52, 0.0 }
 0x3e6   : > { %v1246_v36 = vpop.f32.mrb[58].mxu1 }
 0x3e7   : > { %v2756_v56 = vpack.c.bf16 %v1281_v55, %v1280_v54  ;;  %v1248_v57 = vpop.f32.mrb[59].mxu1  ;;  %v1247_v58 = vadd.f32 %v3484_v62, %v1246_v36 }
 0x3e9   : > { %2757 = vmatpush1.bf16.msra.mxu0 %v2756_v56  ;;  %v1282_v61 = vmax.f32 %v1247_v58, 0.0 }
 0x3ea   : > { %v1251_v59 = vpop.f32.mrb[60].mxu1  ;;  %2758 = vmatprep.subr.bf16.mxu0 %v2932_v11 }
 0x3eb   : > { %v1252_v33 = vadd.f32 %v3484_v62, %v1251_v59  ;;  %v1253_v34 = vpop.f32.mrb[61].mxu1 }
 0x3ed   : > { %v1283_v30 = vmax.f32 %v1252_v33, 0.0 }
 0x3ee   : > { %v1256_v31 = vpop.f32.mrb[62].mxu1 }
 0x3ef   : > { %v2759_v63 = vpack.c.bf16 %v1283_v30, %v1282_v61  ;;  %v1258_v0 = vpop.f32.mrb[63].mxu1  ;;  %v1257_v1 = vadd.f32 %v3484_v62, %v1256_v31 }
 0x3f1   : > { %2760 = vmatpush1.bf16.msra.mxu0 %v2759_v63  ;;  %v1284_v5 = vmax.f32 %v1257_v1, 0.0 }
 0x3f2   : > { %v1261_v2 = vpop.f32.mrb[64].mxu1  ;;  %2761 = vmatprep.subr.bf16.mxu0 %v2932_v11 }
 0x3f3   : > { %v1262_v3 = vadd.f32 %v3484_v62, %v1261_v2  ;;  %v1263_v4 = vpop.f32.mrb[65].mxu1 }
 0x3f5   : > { %v1285_v6 = vmax.f32 %v1262_v3, 0.0 }
 0x3f6   : > { %v1266_v7 = vpop.f32.mrb[66].mxu1 }
 0x3f7   : > { %v2762_v8 = vpack.c.bf16 %v1285_v6, %v1284_v5  ;;  %v1267_v9 = vadd.f32 %v3484_v62, %v1266_v7  ;;  %v1268_v10 = vpop.f32.mrb[67].mxu1  ;;  %v1364_v62 = vld [vmem:[%s3679_s7 + $0x10] sm:$0xff] }
 0x3f8   : > { %v2768_v18 = vpack.c.bf16 %v1365_v17, %v1364_v62 }
 0x3f9   : > { %v1286_v14 = vmax.f32 %v1267_v9, 0.0  ;;  %2763 = vmatpush1.bf16.msra.mxu0 %v2762_v8 }
 0x3fa   : > { %1324 = vmatprep.subr.mxu0 %v2933_v60 }
 0x3fd   : > { %1325 = vmatpush1.msra.mxu0 %v1286_v14 }
 0x3fe   : > { %1357 = vmatmul.mubr.f32.vlgmr.msra.gmra.mrb[34].mxu0 %v1287_v15  ;;  %2764 = vmatprep.subr.bf16.mxu0 %v2932_v11 }
 0x3ff   : > { %2766 = vmatpush3.bf16.msra.mxu0 %v2765_v16  ;;  %2595 = vmatprep.mubr.msk.f32.mxu0 %vm2934_vm1, %v2933_v60 }
 0x400   : > { %2767 = vmatprep.subr.bf16.mxu0 %v2932_v11 }
 0x403   : > { %2769 = vmatpush3.bf16.msra.mxu0 %v2768_v18 }
 0x404   : > { %2770 = vmatprep.subr.bf16.mxu0 %v2932_v11 }
 0x4d1   : > { %v1358_v27 = vpop.f32.mrb[34].mxu0 }
 0x4d2   : > { %2596 = vmatmul.mubr.msk.f32.vlgmr.msra.gmra.mrb[36].mxu0 %vm911_vm2, %v1358_v27  ;;  %v1360_v28 = vpop.f32.mrb[35].mxu0 }
 0x4d3   : > { %2772 = vmatpush3.bf16.msra.mxu0 %v3537_v22  ;;  %2606 = vmatprep.mubr.msk.f32.mxu0 %vm2934_vm1, %v2933_v60 }
 0x4d4   : > { %2773 = vmatprep.subr.bf16.mxu0 %v2932_v11 }
 0x4d7   : > { %2775 = vmatpush3.bf16.msra.mxu0 %v3547_v25 }
 0x4d8   : > { %2776 = vmatprep.subr.bf16.mxu0 %v2932_v11 }
 0x4da   : > { %2607 = vmatmul.mubr.f32.vlgmr.msra.gmra.mrb[38].mxu0 %v2933_v60 }
 0x4db   : > { %2778 = vmatpush3.bf16.msra.mxu0 %v3537_v22  ;;  %2617 = vmatprep.mubr.msk.f32.mxu0 %vm2934_vm1, %v2933_v60 }
 0x4dc   : > { %2779 = vmatprep.subr.bf16.mxu0 %v2932_v11 }
 0x4df   : > { %2781 = vmatpush3.bf16.msra.mxu0 %v3547_v25 }
 0x4e0   : > { %2782 = vmatprep.subr.bf16.mxu0 %v2932_v11 }
 0x5a5   : > { %v1442_v26 = vpop.f32.mrb[36].mxu0 }
 0x5a6   : > { %v1443_v43 = vadd.f32 %v2440_v21, %v1442_v26  ;;  %v2597_v44 = vpop.f32.mrb[37].mxu0 }
 0x5a8   : > { %v1630_v46 = vrot.slane %v1443_v43, %v1629_v35  ;;  %v3568_v47 = vrot.slane %v1443_v43, %v1734_v37  ;;  %v3570_v48 = vrot.slane %v1443_v43, %v1839_v38  ;;  %v3572_v49 = vrot.slane %v1443_v43, %v1944_v39 }
 0x5a9   : > { %v3574_v50 = vrot.slane %v1443_v43, %v2049_v40  ;;  %v3576_v51 = vrot.slane %v1443_v43, %v2154_v41  ;;  %v3578_v52 = vrot.slane %v1443_v43, %v2259_v42  ;;  %v1526_v53 = vrot.slane %v1443_v43, %v1525_v45 }
 0x5ad   : > { %v1519_v54 = vpop.f32.mrb[38].mxu0 }
 0x5ae   : > { %v1527_v55 = vadd.f32 %v1526_v53, %v1519_v54  ;;  %v2608_v36 = vpop.f32.mrb[39].mxu0 }
 0x5b0   : > { %2854 = vtanh.f32 %v1527_v55  ;;  %v2442_v57 = vmul.f32 -1.442695, %v1527_v55 }
 0x5b2   : > { %2856 = vpow2.f32 %v2442_v57 }
 0x5ba   : > { %v2855_v56 = vpop.eup %2854 }
 0x5bb   : > { %1537 = vrot.lane.b32.xlu1 %v2855_v56, %s2935_s15 }
 0x5bc   : > { %v2857_v58 = vpop.eup %2856 }
 0x5bd   : > { %v1531_v59 = vadd.f32 1.0, %v2857_v58 }
 0x5bf   : > { %2858 = vrcp.f32 %v1531_v59 }
 0x5c9   : > { %v2859_v33 = vpop.eup %2858 }
 0x5ca   : > { %v1535_v30 = vmul.f32 0.0, %v2859_v33 }
 0x62d   : > { %v1538_v34 = vpop.permute.xlu1 %1537 }
 0x62e   : > { %v1540_v61 = vmul.f32 %v2859_v33, %v1538_v34 }
 0x630   : > { %1542 = vrot.lane.b32.xlu0 %v1540_v61, %s2936_s16 }
 0x6a2   : > { %v1543_v31 = vpop.permute.xlu0 %1542 }
 0x6a3   : > { %v1545_v63 = vadd.f32 %v1543_v31, %v1535_v30 }
 0x6a5   : > { %2860 = vtanh.f32 %v1545_v63 }
 0x6af   : > { %v2861_v0 = vpop.eup %2860 }
 0x6b0   : > { %1548 = vrot.lane.b32.xlu1 %v2861_v0, %s2935_s15 }
 0x722   : > { %v1549_v1 = vpop.permute.xlu1 %1548 }
 0x723   : > { %v3583_v2 = vmul.f32 %v2859_v33, %v1549_v1 }
 0x725   : > { %1553 = vrot.lane.b32.xlu0 %v3583_v2, %s2936_s16 }
 0x797   : > { %v1554_v3 = vpop.permute.xlu0 %1553 }
 0x798   : > { %2618 = vmatmul.mubr.msk.f32.vlgmr.msra.gmra.mrb[40].mxu0 %vm911_vm2, %v1554_v3 }
 0x799   : > { %2784 = vmatpush3.bf16.msra.mxu0 %v3537_v22  ;;  %2628 = vmatprep.mubr.msk.f32.mxu0 %vm2934_vm1, %v2933_v60 }
 0x79a   : > { %2785 = vmatprep.subr.bf16.mxu0 %v2932_v11 }
 0x79d   : > { %2787 = vmatpush3.bf16.msra.mxu0 %v3547_v25 }
 0x79e   : > { %2788 = vmatprep.subr.bf16.mxu0 %v2932_v11 }
 0x86b   : > { %v1623_v4 = vpop.f32.mrb[40].mxu0 }
 0x86c   : > { %v1631_v5 = vadd.f32 %v1630_v46, %v1623_v4  ;;  %v2619_v6 = vpop.f32.mrb[41].mxu0 }
 0x86e   : > { %2862 = vtanh.f32 %v1631_v5  ;;  %v2444_v8 = vmul.f32 -1.442695, %v1631_v5 }
 0x870   : > { %2864 = vpow2.f32 %v2444_v8 }
 0x878   : > { %v2863_v7 = vpop.eup %2862 }
 0x879   : > { %1641 = vrot.lane.b32.xlu1 %v2863_v7, %s2935_s15 }
 0x87a   : > { %v2865_v9 = vpop.eup %2864 }
 0x87b   : > { %v1635_v10 = vadd.f32 1.0, %v2865_v9 }
 0x87d   : > { %2866 = vrcp.f32 %v1635_v10 }
 0x887   : > { %v2867_v12 = vpop.eup %2866 }
 0x888   : > { %v1639_v15 = vmul.f32 %v2867_v12, %v1545_v63 }
 0x8eb   : > { %v1642_v13 = vpop.permute.xlu1 %1641 }
 0x8ec   : > { %v1644_v14 = vmul.f32 %v2867_v12, %v1642_v13 }
 0x8ee   : > { %1646 = vrot.lane.b32.xlu0 %v1644_v14, %s2936_s16 }
 0x960   : > { %v1647_v16 = vpop.permute.xlu0 %1646 }
 0x961   : > { %v1649_v62 = vadd.f32 %v1647_v16, %v1639_v15 }
 0x963   : > { %2868 = vtanh.f32 %v1649_v62 }
 0x96d   : > { %v2869_v17 = vpop.eup %2868 }
 0x96e   : > { %1652 = vrot.lane.b32.xlu1 %v2869_v17, %s2935_s15 }
 0x9e0   : > { %v1653_v18 = vpop.permute.xlu1 %1652 }
 0x9e1   : > { %v1655_v19 = vmul.f32 %v2867_v12, %v1653_v18 }
 0x9e3   : > { %1658 = vrot.lane.b32.xlu0 %v1655_v19, %s2936_s16  ;;  %v1656_v43 = vmax.f32 %v3583_v2, %v1655_v19 }
 0xa55   : > { %v1659_v20 = vpop.permute.xlu0 %1658 }
 0xa56   : > { %2629 = vmatmul.mubr.msk.f32.vlgmr.msra.gmra.mrb[42].mxu0 %vm911_vm2, %v1659_v20 }
 0xa57   : > { %2790 = vmatpush3.bf16.msra.mxu0 %v3537_v22  ;;  %2639 = vmatprep.mubr.msk.f32.mxu0 %vm2934_vm1, %v2933_v60 }
 0xa58   : > { %2791 = vmatprep.subr.bf16.mxu0 %v2932_v11 }
 0xa5b   : > { %2793 = vmatpush3.bf16.msra.mxu0 %v3547_v25 }
 0xa5c   : > { %2800 = vmatprep.subr.bf16.mxu0 %v2932_v11 }
 0xb29   : > { %v1728_v23 = vpop.f32.mrb[42].mxu0 }
 0xb2a   : > { %v1736_v24 = vadd.f32 %v3568_v47, %v1728_v23  ;;  %v2630_v27 = vpop.f32.mrb[43].mxu0 }
 0xb2c   : > { %2870 = vtanh.f32 %v1736_v24  ;;  %v2446_v29 = vmul.f32 -1.442695, %v1736_v24 }
 0xb2e   : > { %2872 = vpow2.f32 %v2446_v29 }
 0xb36   : > { %v2871_v28 = vpop.eup %2870 }
 0xb37   : > { %1746 = vrot.lane.b32.xlu1 %v2871_v28, %s2935_s15 }
 0xb38   : > { %v2873_v32 = vpop.eup %2872 }
 0xb39   : > { %v1740_v21 = vadd.f32 1.0, %v2873_v32 }
 0xb3b   : > { %2874 = vrcp.f32 %v1740_v21 }
 0xb45   : > { %v2875_v35 = vpop.eup %2874 }
 0xb46   : > { %v1744_v26 = vmul.f32 %v2875_v35, %v1649_v62 }
 0xba9   : > { %v1747_v37 = vpop.permute.xlu1 %1746 }
 0xbaa   : > { %v1749_v38 = vmul.f32 %v2875_v35, %v1747_v37 }
 0xbac   : > { %1751 = vrot.lane.b32.xlu0 %v1749_v38, %s2936_s16 }
 0xc1e   : > { %v1752_v39 = vpop.permute.xlu0 %1751 }
 0xc1f   : > { %v1754_v40 = vadd.f32 %v1752_v39, %v1744_v26 }
 0xc21   : > { %2876 = vtanh.f32 %v1754_v40 }
 0xc2b   : > { %v2877_v41 = vpop.eup %2876 }
 0xc2c   : > { %1757 = vrot.lane.b32.xlu1 %v2877_v41, %s2935_s15 }
 0xc9e   : > { %v1758_v42 = vpop.permute.xlu1 %1757 }
 0xc9f   : > { %v1760_v44 = vmul.f32 %v2875_v35, %v1758_v42 }
 0xca1   : > { %v3610_v45 = vmax.f32 %v1656_v43, %v1760_v44  ;;  %1763 = vrot.lane.b32.xlu0 %v1760_v44, %s2936_s16 }
 0xd13   : > { %v1764_v46 = vpop.permute.xlu0 %1763 }
 0xd14   : > { %2640 = vmatmul.mubr.msk.f32.vlgmr.msra.gmra.mrb[44].mxu0 %vm911_vm2, %v1764_v46 }
 0xd15   : > { %2802 = vmatpush3.bf16.msra.mxu0 %v3537_v22  ;;  %2661 = vmatprep.mubr.msk.f32.mxu0 %vm2934_vm1, %v2933_v60 }
 0xd16   : > { %2803 = vmatprep.subr.bf16.mxu0 %v2932_v11 }
 0xd19   : > { %2805 = vmatpush3.bf16.msra.mxu0 %v3547_v25 }
 0xd1a   : > { %2812 = vmatprep.subr.bf16.mxu0 %v2932_v11 }
 0xde7   : > { %v1833_v47 = vpop.f32.mrb[44].mxu0 }
 0xde8   : > { %v1841_v53 = vadd.f32 %v3570_v48, %v1833_v47  ;;  %v2641_v54 = vpop.f32.mrb[45].mxu0 }
 0xdea   : > { %2878 = vtanh.f32 %v1841_v53  ;;  %v2448_v36 = vmul.f32 -1.442695, %v1841_v53 }
 0xdec   : > { %2880 = vpow2.f32 %v2448_v36 }
 0xdf4   : > { %v2879_v55 = vpop.eup %2878 }
 0xdf5   : > { %1851 = vrot.lane.b32.xlu1 %v2879_v55, %s2935_s15 }
 0xdf6   : > { %v2881_v56 = vpop.eup %2880 }
 0xdf7   : > { %v1845_v57 = vadd.f32 1.0, %v2881_v56 }
 0xdf9   : > { %2882 = vrcp.f32 %v1845_v57 }
 0xe03   : > { %v2883_v58 = vpop.eup %2882 }
 0xe04   : > { %v1849_v34 = vmul.f32 %v2883_v58, %v1754_v40 }
 0xe67   : > { %v1852_v59 = vpop.permute.xlu1 %1851 }
 0xe68   : > { %v1854_v33 = vmul.f32 %v2883_v58, %v1852_v59 }
 0xe6a   : > { %1856 = vrot.lane.b32.xlu0 %v1854_v33, %s2936_s16 }
 0xedc   : > { %v1857_v61 = vpop.permute.xlu0 %1856 }
 0xedd   : > { %v1859_v30 = vadd.f32 %v1857_v61, %v1849_v34 }
 0xedf   : > { %2884 = vtanh.f32 %v1859_v30 }
 0xee9   : > { %v2885_v48 = vpop.eup %2884 }
 0xeea   : > { %1862 = vrot.lane.b32.xlu1 %v2885_v48, %s2935_s15 }
 0xf5c   : > { %v1863_v31 = vpop.permute.xlu1 %1862 }
 0xf5d   : > { %v1865_v63 = vmul.f32 %v2883_v58, %v1863_v31 }
 0xf5f   : > { %v1866_v0 = vmax.f32 %v3610_v45, %v1865_v63  ;;  %1868 = vrot.lane.b32.xlu0 %v1865_v63, %s2936_s16 }
 0xfd1   : > { %v1869_v1 = vpop.permute.xlu0 %1868 }
 0xfd2   : > { %2651 = vmatmul.mubr.msk.f32.vlgmr.msra.gmra.mrb[68].mxu1 %vm911_vm2, %v1869_v1 }
 0xfd3   : > { %2808 = vmatpush3.bf16.msra.mxu1 %v3537_v22  ;;  %2672 = vmatprep.mubr.msk.f32.mxu1 %vm2934_vm1, %v2933_v60 }
 0xfd4   : > { %2809 = vmatprep.subr.bf16.mxu1 %v2932_v11 }
 0xfd7   : > { %2811 = vmatpush3.bf16.msra.mxu1 %v3547_v25 }
0x10a5   : > { %v1938_v2 = vpop.f32.mrb[68].mxu1 }
0x10a6   : > { %v1946_v3 = vadd.f32 %v3572_v49, %v1938_v2  ;;  %v2652_v4 = vpop.f32.mrb[69].mxu1 }
0x10a8   : > { %2886 = vtanh.f32 %v1946_v3  ;;  %v2450_v6 = vmul.f32 -1.442695, %v1946_v3  ;;  %v2457_v3 = vld [vmem:[%s3682_s10] ss:$0 sm:$0xff] }
0x10aa   : > { %2888 = vpow2.f32 %v2450_v6 }
0x10b2   : > { %v2887_v5 = vpop.eup %2886 }
0x10b3   : > { %1956 = vrot.lane.b32.xlu1 %v2887_v5, %s2935_s15 }
0x10b4   : > { %v2889_v7 = vpop.eup %2888 }
0x10b5   : > { %v1950_v8 = vadd.f32 1.0, %v2889_v7 }
0x10b7   : > { %2890 = vrcp.f32 %v1950_v8 }
0x10c1   : > { %v2891_v9 = vpop.eup %2890 }
0x10c2   : > { %v1954_v13 = vmul.f32 %v2891_v9, %v1859_v30 }
0x1125   : > { %v1957_v10 = vpop.permute.xlu1 %1956 }
0x1126   : > { %v1959_v12 = vmul.f32 %v2891_v9, %v1957_v10 }
0x1128   : > { %1961 = vrot.lane.b32.xlu0 %v1959_v12, %s2936_s16 }
0x119a   : > { %v1962_v14 = vpop.permute.xlu0 %1961 }
0x119b   : > { %v1964_v15 = vadd.f32 %v1962_v14, %v1954_v13 }
0x119d   : > { %2892 = vtanh.f32 %v1964_v15 }
0x11a7   : > { %v2893_v49 = vpop.eup %2892 }
0x11a8   : > { %1967 = vrot.lane.b32.xlu1 %v2893_v49, %s2935_s15 }
0x121a   : > { %v1968_v16 = vpop.permute.xlu1 %1967 }
0x121b   : > { %v1970_v62 = vmul.f32 %v2891_v9, %v1968_v16 }
0x121d   : > { %v1971_v17 = vmax.f32 %v1866_v0, %v1970_v62  ;;  %1973 = vrot.lane.b32.xlu0 %v1970_v62, %s2936_s16 }
0x128f   : > { %v1974_v18 = vpop.permute.xlu0 %1973 }
0x1290   : > { %2662 = vmatmul.mubr.msk.f32.vlgmr.msra.gmra.mrb[46].mxu0 %vm911_vm2, %v1974_v18 }
0x1291   : > { %2814 = vmatpush3.bf16.msra.mxu0 %v3537_v22  ;;  %2683 = vmatprep.mubr.msk.f32.mxu0 %vm2934_vm1, %v2933_v60 }
0x1292   : > { %2815 = vmatprep.subr.bf16.mxu0 %v2932_v11 }
0x1295   : > { %2817 = vmatpush3.bf16.msra.mxu0 %v3547_v25 }
0x1363   : > { %v2043_v19 = vpop.f32.mrb[46].mxu0 }
0x1364   : > { %v2051_v20 = vadd.f32 %v3574_v50, %v2043_v19  ;;  %v2663_v23 = vpop.f32.mrb[47].mxu0 }
0x1366   : > { %2894 = vtanh.f32 %v2051_v20  ;;  %v2452_v27 = vmul.f32 -1.442695, %v2051_v20 }
0x1368   : > { %2896 = vpow2.f32 %v2452_v27 }
0x1370   : > { %v2895_v24 = vpop.eup %2894 }
0x1371   : > { %2061 = vrot.lane.b32.xlu1 %v2895_v24, %s2935_s15 }
0x1372   : > { %v2897_v28 = vpop.eup %2896 }
0x1373   : > { %v2055_v29 = vadd.f32 1.0, %v2897_v28 }
0x1375   : > { %2898 = vrcp.f32 %v2055_v29 }
0x137f   : > { %v2899_v22 = vpop.eup %2898 }
0x1380   : > { %v2059_v11 = vmul.f32 %v2899_v22, %v1964_v15  ;;  %v2458_v15 = vld [vmem:[#allocation2] ss:$0 sm:$0xff] }
0x13e3   : > { %v2062_v32 = vpop.permute.xlu1 %2061 }
0x13e4   : > { %v2064_v60 = vmul.f32 %v2899_v22, %v2062_v32 }
0x13e6   : > { %2066 = vrot.lane.b32.xlu0 %v2064_v60, %s2936_s16 }
0x1458   : > { %v2067_v25 = vpop.permute.xlu0 %2066 }
0x1459   : > { %v2069_v21 = vadd.f32 %v2067_v25, %v2059_v11 }
0x145b   : > { %2900 = vtanh.f32 %v2069_v21 }
0x1465   : > { %v2901_v50 = vpop.eup %2900 }
0x1466   : > { %2072 = vrot.lane.b32.xlu1 %v2901_v50, %s2935_s15 }
0x14d8   : > { %v2073_v35 = vpop.permute.xlu1 %2072 }
0x14d9   : > { %v2075_v37 = vmul.f32 %v2899_v22, %v2073_v35 }
0x14db   : > { %v2076_v38 = vmax.f32 %v1971_v17, %v2075_v37  ;;  %2078 = vrot.lane.b32.xlu0 %v2075_v37, %s2936_s16 }
0x154d   : > { %v2079_v26 = vpop.permute.xlu0 %2078 }
0x154e   : > { %2673 = vmatmul.mubr.msk.f32.vlgmr.msra.gmra.mrb[70].mxu1 %vm911_vm2, %v2079_v26 }
0x1621   : > { %v2148_v39 = vpop.f32.mrb[70].mxu1 }
0x1622   : > { %v2156_v40 = vadd.f32 %v3576_v51, %v2148_v39  ;;  %v2674_v41 = vpop.f32.mrb[71].mxu1 }
0x1624   : > { %2902 = vtanh.f32 %v2156_v40  ;;  %v2454_v43 = vmul.f32 -1.442695, %v2156_v40 }
0x1626   : > { %2904 = vpow2.f32 %v2454_v43 }
0x162e   : > { %v2903_v42 = vpop.eup %2902 }
0x162f   : > { %2166 = vrot.lane.b32.xlu1 %v2903_v42, %s2935_s15 }
0x1630   : > { %v2905_v44 = vpop.eup %2904 }
0x1631   : > { %v2160_v45 = vadd.f32 1.0, %v2905_v44 }
0x1633   : > { %2906 = vrcp.f32 %v2160_v45 }
0x163d   : > { %v2907_v46 = vpop.eup %2906 }
0x163e   : > { %v2164_v54 = vmul.f32 %v2907_v46, %v2069_v21 }
0x16a1   : > { %v2167_v47 = vpop.permute.xlu1 %2166 }
0x16a2   : > { %v2169_v53 = vmul.f32 %v2907_v46, %v2167_v47 }
0x16a4   : > { %2171 = vrot.lane.b32.xlu0 %v2169_v53, %s2936_s16 }
0x1716   : > { %v2172_v55 = vpop.permute.xlu0 %2171 }
0x1717   : > { %v2174_v36 = vadd.f32 %v2172_v55, %v2164_v54 }
0x1719   : > { %2908 = vtanh.f32 %v2174_v36 }
0x1723   : > { %v2909_v51 = vpop.eup %2908 }
0x1724   : > { %2177 = vrot.lane.b32.xlu1 %v2909_v51, %s2935_s15 }
0x1796   : > { %v2178_v56 = vpop.permute.xlu1 %2177 }
0x1797   : > { %v2180_v57 = vmul.f32 %v2907_v46, %v2178_v56 }
0x1799   : > { %v2181_v58 = vmax.f32 %v2076_v38, %v2180_v57  ;;  %2183 = vrot.lane.b32.xlu0 %v2180_v57, %s2936_s16 }
0x180b   : > { %v2184_v59 = vpop.permute.xlu0 %2183 }
0x180c   : > { %2684 = vmatmul.mubr.msk.f32.vlgmr.msra.gmra.mrb[48].mxu0 %vm911_vm2, %v2184_v59 }
0x18df   : > { %v2253_v33 = vpop.f32.mrb[48].mxu0 }
0x18e0   : > { %v2261_v34 = vadd.f32 %v3578_v52, %v2253_v33  ;;  %v2685_v61 = vpop.f32.mrb[49].mxu0 }
0x18e2   : > { %2910 = vtanh.f32 %v2261_v34  ;;  %v2456_v48 = vmul.f32 -1.442695, %v2261_v34 }
0x18e4   : > { %2912 = vpow2.f32 %v2456_v48 }
0x18ec   : > { %v2911_v30 = vpop.eup %2910 }
0x18ed   : > { %2271 = vrot.lane.b32.xlu1 %v2911_v30, %s2935_s15 }
0x18ee   : > { %v2913_v31 = vpop.eup %2912 }
0x18ef   : > { %v2265_v63 = vadd.f32 1.0, %v2913_v31 }
0x18f1   : > { %2914 = vrcp.f32 %v2265_v63 }
0x18fb   : > { %v2915_v0 = vpop.eup %2914 }
0x18fc   : > { %v2269_v52 = vmul.f32 %v2915_v0, %v2174_v36 }
0x195f   : > { %v2272_v1 = vpop.permute.xlu1 %2271 }
0x1960   : > { %v2274_v2 = vmul.f32 %v2915_v0, %v2272_v1 }
0x1962   : > { %2276 = vrot.lane.b32.xlu0 %v2274_v2, %s2936_s16 }
0x1966   : > { %2293 = vrot.lane.b32.xlu0 %v2457_v3, %s2937_s19 }
0x19d4   : > { %v2277_v4 = vpop.permute.xlu0 %2276 }
0x19d5   : > { %v2279_v5 = vadd.f32 %v2277_v4, %v2269_v52 }
0x19d7   : > { %2916 = vtanh.f32 %v2279_v5 }
0x19d8   : > { %v2294_v9 = vpop.permute.xlu0 %2293 }
0x19e1   : > { %v2917_v6 = vpop.eup %2916 }
0x19e2   : > { %2282 = vrot.lane.b32.xlu1 %v2917_v6, %s2935_s15 }
0x1a54   : > { %v2283_v7 = vpop.permute.xlu1 %2282 }
0x1a55   : > { %v2285_v8 = vmul.f32 %v2915_v0, %v2283_v7 }
0x1a57   : > { %v2286_v10 = vmax.f32 %v2181_v58, %v2285_v8 }
0x1a59   : > { %v2296_v12 = vmul.f32 %v2294_v9, %v2286_v10 }
0x1a5b   : > { %2298 = vrot.lane.b32.xlu1 %v2296_v12, %s2936_s16 }
0x1acd   : > { %v2299_v13 = vpop.permute.xlu1 %2298 }
0x1ace   : > { %v2301_v14 = vsel %vm911_vm2, %v2299_v13, 0.0 }
0x1acf   : > { %2302 = vadd.xlane.f32.xlu0 %v2301_v14 }
0x1b5c   : > { %v2303_v49 = vpop.xlane.xlu0 %2302 }
0x1b5d   : > { %v2311_v16 = vadd.f32 %v2458_v15, %v2303_v49 }
0x1b5f   : > { %v2459_v62 = vmul.f32 -1.442695, %v2311_v16 }
0x1b61   : > { %2918 = vpow2.f32 %v2459_v62 }
0x1b6b   : > { %v2919_v17 = vpop.eup %2918 }
0x1b6c   : > { %v2315_v18 = vadd.f32 1.0, %v2919_v17 }
0x1b6e   : > { %2920 = vrcp.f32 %v2315_v18 }
0x1b78   : > { %v2921_v19 = vpop.eup %2920 }
0x1b79   : > { %2320 = vperm.xlu1 %2852, %v2921_v19  }
0x1bf8   : > { %v2321_v20 = vpop.permute.xlu1 %2320 }
0x1bf9   : > { %2323 = vst [vmem:[%s415_s25] sm:$0xff] %v2321_v20 }
0x1bfa PF: > { %s24_s23 = sadd.s32 1, %s2928_s23  }
0x1bfb   : > { %p21_p5 = scmp.ge.s32.totalorder %s24_s23, 4  }
0x1bfd   :  { %23 = sbr.rel (!%p21_p5) target bundleno = 3 (0x3), region = 98 }

</bundles_post_ra>
